<compile_context>
chip_gen: v5e
topology: v5e:2x2
jax: 0.10.0
libtpu: 0.0.40
codegen_flags: <defaults>
</compile_context>

<pallas_src>
import jax
import jax.numpy as jnp
from jax import lax
from jax.experimental import pallas as pl
from jax.experimental.pallas import tpu as pltpu

# ---- module hyper-parameters (GNN defaults: gnn_type='gat', JK='last', readout='add') ----
NUM_LAYER = 3
EMB_DIM = 32
NUM_NODE_FEATURES = 8
NUM_EDGE_FEATURES = 4
NODES_PER_GRAPH = 8
N_GRAPHS = 32                                   # batched so a block is 128 nodes
N_NODES = N_GRAPHS * NODES_PER_GRAPH            # 256
NODES_PER_BLOCK = 128
N_BLOCKS = N_NODES // NODES_PER_BLOCK           # 2
GRAPHS_PER_BLOCK = N_GRAPHS // N_BLOCKS         # 16
BN_EPS = 1e-5
LEAKY_SLOPE = 0.2                               # PyG GATConv default negative_slope
NEG_MASK = -1e30                                # non-edge bias (folded into edge logits)


# -------------------------------------------------------------------------------------
# Pallas kernel (per 128-node block):
#   x_linear -> [GATConv -> folded BatchNorm(eval)+bias -> (ReLU except last)] x L
#   -> node_representation block, global_add_pool block
# -------------------------------------------------------------------------------------
def gnn_kernel(x_ref, ae_ref, pool_ref,
               wx_ref, bx_ref, wsrc_ref, asrc_ref, adstT_ref,
               bns_ref, bnt_ref,
               node_out_ref, graph_out_ref):
    num_layers = wsrc_ref.shape[0]

    # x = self.x_linear(x)
    h = jnp.dot(x_ref[...], wx_ref[...],
                preferred_element_type=jnp.float32) + bx_ref[...]        # [Nb, D]

    for l in range(num_layers):
        # ---- GATConv(emb_dim, emb_dim, heads=1, edge_dim=Fe) ----
        hs = jnp.dot(h, wsrc_ref[l], preferred_element_type=jnp.float32)            # lin_src(h)
        alpha_dst = jnp.dot(hs, adstT_ref[l], preferred_element_type=jnp.float32)   # [Nb, 1]
        # per-source term as a [1, Nb] row WITHOUT materializing hs.T:
        alpha_src = lax.dot_general(asrc_ref[l], hs,
                                    dimension_numbers=(((1,), (1,)), ((), ())),
                                    preferred_element_type=jnp.float32)             # [1, Nb]

        # ae_ref already holds (edge-attr contribution) + (-1e30 on non-edges)
        logits = alpha_dst + alpha_src + ae_ref[l]                       # [Nb, Nb] (dst, src)
        logits = jnp.maximum(logits, LEAKY_SLOPE * logits)               # leaky_relu(., 0.2)

        # softmax over sources (per destination row); masked entries underflow to exactly 0,
        # normalization deferred past the aggregation matmul.
        lmax = jnp.max(logits, axis=-1, keepdims=True)
        p = jnp.exp(logits - lmax)
        inv = pl.reciprocal(jnp.sum(p, axis=-1, keepdims=True), approx=True)  # EUP path

        hn = jnp.dot(p, hs, preferred_element_type=jnp.float32) * inv    # aggregate, then scale
        # GATConv bias + eval BatchNorm folded into a single per-layer scale/shift
        hn = hn * bns_ref[l] + bnt_ref[l]
        # ReLU for all but the last layer; dropout(p=0.0, eval) == identity
        if l < num_layers - 1:
            hn = jnp.maximum(hn, 0.0)
        h = hn

    node_out_ref[...] = h                                                # JK='last'
    # readout='add': global_add_pool == one-hot(batch) @ node_rep (block-local graphs)
    graph_out_ref[...] = jnp.dot(pool_ref[...], h, preferred_element_type=jnp.float32)


# -------------------------------------------------------------------------------------
# Plain-JAX glue: sparse graph -> dense adjacency / edge-attr slabs, parameter folding,
# then a gridded pallas_call over 128-node blocks.
# -------------------------------------------------------------------------------------
def build_dense_graph(edge_index, edge_attr, batch, n_nodes, n_graphs):
    src, dst = edge_index[0], edge_index[1]
    diag = jnp.arange(n_nodes)

    adj = jnp.zeros((n_nodes, n_nodes), jnp.float32).at[dst, src].set(1.0)
    adj = adj.at[diag, diag].set(1.0)                                   # add_self_loops

    edense = jnp.zeros((n_nodes, n_nodes, NUM_EDGE_FEATURES), jnp.float32)
    edense = edense.at[dst, src, :].set(edge_attr)
    # fill_value='mean': self-loop attr = scatter-mean of incoming edge_attr per destination
    deg = jnp.zeros((n_nodes,), jnp.float32).at[dst].add(1.0)
    sum_in = jnp.zeros((n_nodes, NUM_EDGE_FEATURES), jnp.float32).at[dst].add(edge_attr)
    loop_attr = sum_in / jnp.maximum(deg, 1.0)[:, None]
    edense = edense.at[diag, diag, :].set(loop_attr)
    edge_f = jnp.transpose(edense, (2, 0, 1))                           # [Fe, N, N]

    pool = (jnp.arange(n_graphs)[:, None] == batch[None, :]).astype(jnp.float32)  # [G, N]
    return adj, edge_f, pool


def gnn_forward(x, edge_index, edge_attr, batch, params):
    n_nodes = x.shape[0]
    adj, edge_f, pool = build_dense_graph(edge_index, edge_attr, batch, n_nodes, N_GRAPHS)

    HP = jax.lax.Precision.HIGHEST
    L, D, Fn, Fe = NUM_LAYER, EMB_DIM, NUM_NODE_FEATURES, NUM_EDGE_FEATURES
    NB, GB = NODES_PER_BLOCK, GRAPHS_PER_BLOCK

    # ---- parameter-only folds (done once per call, outside the kernel) ----
    # w_eff[l] = att_edge[l] @ W_edge[l]  -> [L, Fe]; then pre-contract with edge slabs
    # and fold the non-edge -inf bias so the kernel never needs the adjacency matrix.
    w_eff = jnp.einsum("lod,ldf->lf", params["a_edge"], params["WedgeT"], precision=HP)
    neg_bias = jnp.where(adj > 0.0, 0.0, NEG_MASK)                      # [N, N]
    alpha_e = (jnp.einsum("fij,lf->lij", edge_f, w_eff, precision=HP)
               + neg_bias[None])                                        # [L, N, N]
    # eval-mode BatchNorm + GATConv bias folded into per-layer scale/shift.
    bn_scale = params["bn_gamma"] * jax.lax.rsqrt(params["bn_var"] + BN_EPS)          # [L,1,D]
    bn_shift = params["bn_beta"] + (params["gbias"] - params["bn_mean"]) * bn_scale   # [L,1,D]

    grid = (n_nodes // NB,)

    def rep(shape):  # replicated (parameter) spec: same block every grid step
        return pl.BlockSpec(shape, lambda i, _s=shape: (0,) * len(_s))

    in_specs = [
        pl.BlockSpec((NB, Fn), lambda i: (i, 0)),          # x
        pl.BlockSpec((L, NB, NB), lambda i: (0, i, i)),    # pre-contracted edge logits + mask
        pl.BlockSpec((GB, NB), lambda i: (i, i)),          # pooling one-hot (block-diagonal)
        rep((Fn, D)), rep((1, D)),                         # Wx, bx
        rep((L, D, D)), rep((L, 1, D)), rep((L, D, 1)),    # Wsrc, att_src, att_dst^T
        rep((L, 1, D)), rep((L, 1, D)),                    # folded BN scale / shift
    ]
    out_specs = (pl.BlockSpec((NB, D), lambda i: (i, 0)),
                 pl.BlockSpec((GB, D), lambda i: (i, 0)))
    out_shape = (jax.ShapeDtypeStruct((n_nodes, D), jnp.float32),
                 jax.ShapeDtypeStruct((N_GRAPHS, D), jnp.float32))

    node_rep, graph_rep = pl.pallas_call(
        gnn_kernel,
        grid=grid,
        in_specs=in_specs,
        out_specs=out_specs,
        out_shape=out_shape,
        compiler_params=pltpu.CompilerParams(dimension_semantics=("parallel",)),
    )(x, alpha_e, pool,
      params["Wx"], params["bx"],
      params["Wsrc"], params["a_src"], params["a_dstT"],
      bn_scale, bn_shift)
    return node_rep, graph_rep


# -------------------------------------------------------------------------------------
# Pure-JAX reference (global dense math, raw un-folded parameters) for validation.
# -------------------------------------------------------------------------------------
def gnn_reference(x, edge_index, edge_attr, batch, params):
    HP = jax.lax.Precision.HIGHEST
    adj, edge_f, pool = build_dense_graph(edge_index, edge_attr, batch, x.shape[0], N_GRAPHS)
    h = jnp.dot(x, params["Wx"], precision=HP) + params["bx"]
    L = params["Wsrc"].shape[0]
    for l in range(L):
        hs = jnp.dot(h, params["Wsrc"][l], precision=HP)
        a_s = jnp.dot(params["a_src"][l], hs.T, precision=HP)            # [1, N]
        a_d = jnp.dot(hs, params["a_dstT"][l], precision=HP)             # [N, 1]
        w_eff = jnp.dot(params["a_edge"][l], params["WedgeT"][l], precision=HP)[0]   # [Fe]
        alpha_e = jnp.einsum("fij,f->ij", edge_f, w_eff, precision=HP)
        logits = a_d + a_s + alpha_e
        logits = jnp.where(logits >= 0.0, logits, LEAKY_SLOPE * logits)
        logits = jnp.where(adj > 0.0, logits, NEG_MASK)
        p = jnp.exp(logits - jnp.max(logits, axis=-1, keepdims=True))
        p = jnp.where(adj > 0.0, p, 0.0)
        att = p / jnp.sum(p, axis=-1, keepdims=True)
        hn = jnp.dot(att, hs, precision=HP) + params["gbias"][l]
        hn = ((hn - params["bn_mean"][l]) * jax.lax.rsqrt(params["bn_var"][l] + BN_EPS)
              * params["bn_gamma"][l] + params["bn_beta"][l])
        if l < L - 1:
            hn = jnp.maximum(hn, 0.0)
        h = hn
    return h, jnp.dot(pool, h, precision=HP)


# -------------------------------------------------------------------------------------
def make_params(key):
    ks = jax.random.split(key, 12)
    s = 0.2
    L, D, Fn, Fe = NUM_LAYER, EMB_DIM, NUM_NODE_FEATURES, NUM_EDGE_FEATURES
    return {
        "Wx":      s * jax.random.normal(ks[0], (Fn, D), jnp.float32),
        "bx":      s * jax.random.normal(ks[1], (1, D), jnp.float32),
        "Wsrc":    s * jax.random.normal(ks[2], (L, D, D), jnp.float32),   # GATConv.lin_src (no bias)
        "a_src":   s * jax.random.normal(ks[3], (L, 1, D), jnp.float32),   # GATConv.att_src
        "a_dstT":  s * jax.random.normal(ks[4], (L, D, 1), jnp.float32),   # GATConv.att_dst (transposed)
        "WedgeT":  s * jax.random.normal(ks[5], (L, D, Fe), jnp.float32),  # GATConv.lin_edge.weight (as [D,Fe])
        "a_edge":  s * jax.random.normal(ks[6], (L, 1, D), jnp.float32),   # GATConv.att_edge
        "gbias":   s * jax.random.normal(ks[7], (L, 1, D), jnp.float32),   # GATConv.bias
        "bn_gamma": 1.0 + 0.1 * jax.random.normal(ks[8], (L, 1, D), jnp.float32),
        "bn_beta":  0.1 * jax.random.normal(ks[9], (L, 1, D), jnp.float32),
        "bn_mean":  0.1 * jax.random.normal(ks[10], (L, 1, D), jnp.float32),
        "bn_var":   1.0 + 0.1 * jnp.abs(jax.random.normal(ks[11], (L, 1, D), jnp.float32)),
    }


def make_graph(key):
    # N_GRAPHS graphs of 8 nodes each; directed ring edges in both directions (no self-loops,
    # matching GATConv's remove_self_loops + add_self_loops behavior handled in glue).
    # Batched so the node dim is a multiple of 128 (one MXU-friendly block per grid step).
    edges = []
    for g in range(N_GRAPHS):
        base = g * NODES_PER_GRAPH
        for k in range(NODES_PER_GRAPH):
            a, b = base + k, base + (k + 1) % NODES_PER_GRAPH
            edges.append((a, b))
            edges.append((b, a))
    src = jnp.array([e[0] for e in edges], dtype=jnp.int32)
    dst = jnp.array([e[1] for e in edges], dtype=jnp.int32)
    edge_index = jnp.stack([src, dst], axis=0)                     # [2, E]
    kx, ke = jax.random.split(key)
    x = jax.random.normal(kx, (N_NODES, NUM_NODE_FEATURES), jnp.float32)
    edge_attr = jax.random.normal(ke, (edge_index.shape[1], NUM_EDGE_FEATURES), jnp.float32)
    batch = jnp.repeat(jnp.arange(N_GRAPHS, dtype=jnp.int32), NODES_PER_GRAPH)   # [N]
    return x, edge_index, edge_attr, batch


if __name__ == "__main__":
    root = jax.random.PRNGKey(0)
    k_graph, k_params = jax.random.split(root)
    x, edge_index, edge_attr, batch = make_graph(k_graph)
    params = make_params(k_params)

    node_rep, graph_rep = gnn_forward(x, edge_index, edge_attr, batch, params)
    jax.block_until_ready((node_rep, graph_rep))

    node_ref, graph_ref = gnn_reference(x, edge_index, edge_attr, batch, params)
    assert node_rep.shape == (N_NODES, EMB_DIM) and graph_rep.shape == (N_GRAPHS, EMB_DIM)
    assert jnp.allclose(node_rep, node_ref, atol=1e-2, rtol=1e-2)
    assert jnp.allclose(graph_rep, graph_ref, atol=1e-2, rtol=1e-2)

    # TODO(synk): readout='gru' branch (mol_conv/mol_gru) and training-mode BatchNorm/dropout
    # are not exercised by the default config (readout='add', dropout=0.0, eval) and are omitted.
    print("KERNEL_OK")
</pallas_src>

<mosaic_0001>
module attributes {stable_mosaic.version = 11 : i64} {
  func.func @gnn_kernel(%arg0: i32, %arg1: memref<128x8xf32, #tpu.memory_space<vmem>>, %arg2: memref<3x128x128xf32, #tpu.memory_space<vmem>>, %arg3: memref<16x128xf32, #tpu.memory_space<vmem>>, %arg4: memref<8x32xf32, #tpu.memory_space<vmem>>, %arg5: memref<1x32xf32, #tpu.memory_space<vmem>>, %arg6: memref<3x32x32xf32, #tpu.memory_space<vmem>>, %arg7: memref<3x1x32xf32, #tpu.memory_space<vmem>>, %arg8: memref<3x32x1xf32, #tpu.memory_space<vmem>>, %arg9: memref<3x1x32xf32, #tpu.memory_space<vmem>>, %arg10: memref<3x1x32xf32, #tpu.memory_space<vmem>>, %arg11: memref<128x32xf32, #tpu.memory_space<vmem>>, %arg12: memref<16x32xf32, #tpu.memory_space<vmem>>) attributes {dimension_semantics = [#tpu.dimension_semantics<parallel>], iteration_bounds = array<i64: 2>, scalar_prefetch = 0 : i64, scratch_operands = 0 : i64, tpu.core_type = #tpu.core_type<tc>, window_params = [{transform_indices = @transform_0, window_bounds = array<i64: 128, 8>}, {transform_indices = @transform_1, window_bounds = array<i64: 3, 128, 128>}, {transform_indices = @transform_2, window_bounds = array<i64: 16, 128>}, {pipeline_mode = #tpu.pipeline_mode<synchronous>, transform_indices = @transform_3, window_bounds = array<i64: 8, 32>}, {pipeline_mode = #tpu.pipeline_mode<synchronous>, transform_indices = @transform_4, window_bounds = array<i64: 1, 32>}, {pipeline_mode = #tpu.pipeline_mode<synchronous>, transform_indices = @transform_5, window_bounds = array<i64: 3, 32, 32>}, {pipeline_mode = #tpu.pipeline_mode<synchronous>, transform_indices = @transform_6, window_bounds = array<i64: 3, 1, 32>}, {pipeline_mode = #tpu.pipeline_mode<synchronous>, transform_indices = @transform_7, window_bounds = array<i64: 3, 32, 1>}, {pipeline_mode = #tpu.pipeline_mode<synchronous>, transform_indices = @transform_8, window_bounds = array<i64: 3, 1, 32>}, {pipeline_mode = #tpu.pipeline_mode<synchronous>, transform_indices = @transform_9, window_bounds = array<i64: 3, 1, 32>}, {transform_indices = @transform_10, window_bounds = array<i64: 128, 32>}, {transform_indices = @transform_11, window_bounds = array<i64: 16, 32>}]} {
    %c0 = arith.constant 0 : index
    %c0_0 = arith.constant 0 : index
    %0 = vector.load %arg1[%c0, %c0_0] : memref<128x8xf32, #tpu.memory_space<vmem>>, vector<128x8xf32>
    %c0_1 = arith.constant 0 : index
    %c0_2 = arith.constant 0 : index
    %1 = vector.load %arg4[%c0_1, %c0_2] : memref<8x32xf32, #tpu.memory_space<vmem>>, vector<8x32xf32>
    %cst = arith.constant dense<0.000000e+00> : vector<128x32xf32>
    %2 = tpu.matmul %0, %1, %cst {dimension_numbers = #tpu.dot_dimension_numbers<[1], [0], [0], [1], [0, 0, 1, 1], [], []>} : vector<128x8xf32>, vector<8x32xf32>, vector<128x32xf32> -> vector<128x32xf32>
    %c0_3 = arith.constant 0 : index
    %c0_4 = arith.constant 0 : index
    %3 = vector.load %arg5[%c0_3, %c0_4] : memref<1x32xf32, #tpu.memory_space<vmem>>, vector<1x32xf32>
    %4 = vector.broadcast %3 : vector<1x32xf32> to vector<128x32xf32>
    %5 = arith.addf %2, %4 : vector<128x32xf32>
    %c0_5 = arith.constant 0 : index
    %c0_6 = arith.constant 0 : index
    %c0_7 = arith.constant 0 : index
    %6 = vector.load %arg6[%c0_5, %c0_6, %c0_7] : memref<3x32x32xf32, #tpu.memory_space<vmem>>, vector<1x32x32xf32>
    %7 = vector.shape_cast %6 : vector<1x32x32xf32> to vector<32x32xf32>
    %cst_8 = arith.constant dense<0.000000e+00> : vector<128x32xf32>
    %8 = tpu.matmul %5, %7, %cst_8 {dimension_numbers = #tpu.dot_dimension_numbers<[1], [0], [0], [1], [0, 0, 1, 1], [], []>} : vector<128x32xf32>, vector<32x32xf32>, vector<128x32xf32> -> vector<128x32xf32>
    %c0_9 = arith.constant 0 : index
    %c0_10 = arith.constant 0 : index
    %c0_11 = arith.constant 0 : index
    %9 = vector.load %arg8[%c0_9, %c0_10, %c0_11] : memref<3x32x1xf32, #tpu.memory_space<vmem>>, vector<1x32x1xf32>
    %10 = vector.shape_cast %9 : vector<1x32x1xf32> to vector<32x1xf32>
    %cst_12 = arith.constant dense<0.000000e+00> : vector<128x1xf32>
    %11 = tpu.matmul %8, %10, %cst_12 {dimension_numbers = #tpu.dot_dimension_numbers<[1], [0], [0], [1], [0, 0, 1, 1], [], []>} : vector<128x32xf32>, vector<32x1xf32>, vector<128x1xf32> -> vector<128x1xf32>
    %c0_13 = arith.constant 0 : index
    %c0_14 = arith.constant 0 : index
    %c0_15 = arith.constant 0 : index
    %12 = vector.load %arg7[%c0_13, %c0_14, %c0_15] : memref<3x1x32xf32, #tpu.memory_space<vmem>>, vector<1x1x32xf32>
    %13 = vector.shape_cast %12 : vector<1x1x32xf32> to vector<1x32xf32>
    %cst_16 = arith.constant dense<0.000000e+00> : vector<1x128xf32>
    %14 = tpu.matmul %13, %8, %cst_16 {dimension_numbers = #tpu.dot_dimension_numbers<[1], [1], [0], [0], [0, 0, 1, 0], [], []>} : vector<1x32xf32>, vector<128x32xf32>, vector<1x128xf32> -> vector<1x128xf32>
    %15 = vector.broadcast %11 : vector<128x1xf32> to vector<128x128xf32>
    %16 = vector.broadcast %14 : vector<1x128xf32> to vector<128x128xf32>
    %17 = arith.addf %15, %16 : vector<128x128xf32>
    %c0_17 = arith.constant 0 : index
    %c0_18 = arith.constant 0 : index
    %c0_19 = arith.constant 0 : index
    %18 = vector.load %arg2[%c0_17, %c0_18, %c0_19] : memref<3x128x128xf32, #tpu.memory_space<vmem>>, vector<1x128x128xf32>
    %19 = vector.shape_cast %18 : vector<1x128x128xf32> to vector<128x128xf32>
    %20 = arith.addf %17, %19 : vector<128x128xf32>
    %cst_20 = arith.constant 2.000000e-01 : f32
    %21 = vector.broadcast %cst_20 : f32 to vector<128x128xf32>
    %22 = arith.mulf %21, %20 : vector<128x128xf32>
    %23 = arith.maximumf %20, %22 : vector<128x128xf32>
    %cst_21 = arith.constant dense<0xFF800000> : vector<128xf32>
    %24 = vector.multi_reduction <maximumf>, %23, %cst_21 [1] : vector<128x128xf32> to vector<128xf32>
    %25 = vector.shape_cast %24 : vector<128xf32> to vector<128x1xf32>
    %26 = vector.broadcast %25 : vector<128x1xf32> to vector<128x128xf32>
    %27 = arith.subf %23, %26 : vector<128x128xf32>
    %28 = math.exp %27 : vector<128x128xf32>
    %cst_22 = arith.constant dense<0.000000e+00> : vector<128xf32>
    %29 = vector.multi_reduction <add>, %28, %cst_22 [1] : vector<128x128xf32> to vector<128xf32>
    %30 = vector.shape_cast %29 : vector<128xf32> to vector<128x1xf32>
    %31 = tpu.reciprocal %30 {approx = true} : vector<128x1xf32> -> vector<128x1xf32>
    %cst_23 = arith.constant dense<0.000000e+00> : vector<128x32xf32>
    %32 = tpu.matmul %28, %8, %cst_23 {dimension_numbers = #tpu.dot_dimension_numbers<[1], [0], [0], [1], [0, 0, 1, 1], [], []>} : vector<128x128xf32>, vector<128x32xf32>, vector<128x32xf32> -> vector<128x32xf32>
    %33 = vector.broadcast %31 : vector<128x1xf32> to vector<128x32xf32>
    %34 = arith.mulf %32, %33 : vector<128x32xf32>
    %c0_24 = arith.constant 0 : index
    %c0_25 = arith.constant 0 : index
    %c0_26 = arith.constant 0 : index
    %35 = vector.load %arg9[%c0_24, %c0_25, %c0_26] : memref<3x1x32xf32, #tpu.memory_space<vmem>>, vector<1x1x32xf32>
    %36 = vector.shape_cast %35 : vector<1x1x32xf32> to vector<1x32xf32>
    %37 = vector.broadcast %36 : vector<1x32xf32> to vector<128x32xf32>
    %38 = arith.mulf %34, %37 : vector<128x32xf32>
    %c0_27 = arith.constant 0 : index
    %c0_28 = arith.constant 0 : index
    %c0_29 = arith.constant 0 : index
    %39 = vector.load %arg10[%c0_27, %c0_28, %c0_29] : memref<3x1x32xf32, #tpu.memory_space<vmem>>, vector<1x1x32xf32>
    %40 = vector.shape_cast %39 : vector<1x1x32xf32> to vector<1x32xf32>
    %41 = vector.broadcast %40 : vector<1x32xf32> to vector<128x32xf32>
    %42 = arith.addf %38, %41 : vector<128x32xf32>
    %cst_30 = arith.constant 0.000000e+00 : f32
    %43 = vector.broadcast %cst_30 : f32 to vector<128x32xf32>
    %44 = arith.maximumf %42, %43 : vector<128x32xf32>
    %c1 = arith.constant 1 : index
    %c0_31 = arith.constant 0 : index
    %c0_32 = arith.constant 0 : index
    %45 = vector.load %arg6[%c1, %c0_31, %c0_32] : memref<3x32x32xf32, #tpu.memory_space<vmem>>, vector<1x32x32xf32>
    %46 = vector.shape_cast %45 : vector<1x32x32xf32> to vector<32x32xf32>
    %cst_33 = arith.constant dense<0.000000e+00> : vector<128x32xf32>
    %47 = tpu.matmul %44, %46, %cst_33 {dimension_numbers = #tpu.dot_dimension_numbers<[1], [0], [0], [1], [0, 0, 1, 1], [], []>} : vector<128x32xf32>, vector<32x32xf32>, vector<128x32xf32> -> vector<128x32xf32>
    %c1_34 = arith.constant 1 : index
    %c0_35 = arith.constant 0 : index
    %c0_36 = arith.constant 0 : index
    %48 = vector.load %arg8[%c1_34, %c0_35, %c0_36] : memref<3x32x1xf32, #tpu.memory_space<vmem>>, vector<1x32x1xf32>
    %49 = vector.shape_cast %48 : vector<1x32x1xf32> to vector<32x1xf32>
    %cst_37 = arith.constant dense<0.000000e+00> : vector<128x1xf32>
    %50 = tpu.matmul %47, %49, %cst_37 {dimension_numbers = #tpu.dot_dimension_numbers<[1], [0], [0], [1], [0, 0, 1, 1], [], []>} : vector<128x32xf32>, vector<32x1xf32>, vector<128x1xf32> -> vector<128x1xf32>
    %c1_38 = arith.constant 1 : index
    %c0_39 = arith.constant 0 : index
    %c0_40 = arith.constant 0 : index
    %51 = vector.load %arg7[%c1_38, %c0_39, %c0_40] : memref<3x1x32xf32, #tpu.memory_space<vmem>>, vector<1x1x32xf32>
    %52 = vector.shape_cast %51 : vector<1x1x32xf32> to vector<1x32xf32>
    %cst_41 = arith.constant dense<0.000000e+00> : vector<1x128xf32>
    %53 = tpu.matmul %52, %47, %cst_41 {dimension_numbers = #tpu.dot_dimension_numbers<[1], [1], [0], [0], [0, 0, 1, 0], [], []>} : vector<1x32xf32>, vector<128x32xf32>, vector<1x128xf32> -> vector<1x128xf32>
    %54 = vector.broadcast %50 : vector<128x1xf32> to vector<128x128xf32>
    %55 = vector.broadcast %53 : vector<1x128xf32> to vector<128x128xf32>
    %56 = arith.addf %54, %55 : vector<128x128xf32>
    %c1_42 = arith.constant 1 : index
    %c0_43 = arith.constant 0 : index
    %c0_44 = arith.constant 0 : index
    %57 = vector.load %arg2[%c1_42, %c0_43, %c0_44] : memref<3x128x128xf32, #tpu.memory_space<vmem>>, vector<1x128x128xf32>
    %58 = vector.shape_cast %57 : vector<1x128x128xf32> to vector<128x128xf32>
    %59 = arith.addf %56, %58 : vector<128x128xf32>
    %cst_45 = arith.constant 2.000000e-01 : f32
    %60 = vector.broadcast %cst_45 : f32 to vector<128x128xf32>
    %61 = arith.mulf %60, %59 : vector<128x128xf32>
    %62 = arith.maximumf %59, %61 : vector<128x128xf32>
    %cst_46 = arith.constant dense<0xFF800000> : vector<128xf32>
    %63 = vector.multi_reduction <maximumf>, %62, %cst_46 [1] : vector<128x128xf32> to vector<128xf32>
    %64 = vector.shape_cast %63 : vector<128xf32> to vector<128x1xf32>
    %65 = vector.broadcast %64 : vector<128x1xf32> to vector<128x128xf32>
    %66 = arith.subf %62, %65 : vector<128x128xf32>
    %67 = math.exp %66 : vector<128x128xf32>
    %cst_47 = arith.constant dense<0.000000e+00> : vector<128xf32>
    %68 = vector.multi_reduction <add>, %67, %cst_47 [1] : vector<128x128xf32> to vector<128xf32>
    %69 = vector.shape_cast %68 : vector<128xf32> to vector<128x1xf32>
    %70 = tpu.reciprocal %69 {approx = true} : vector<128x1xf32> -> vector<128x1xf32>
    %cst_48 = arith.constant dense<0.000000e+00> : vector<128x32xf32>
    %71 = tpu.matmul %67, %47, %cst_48 {dimension_numbers = #tpu.dot_dimension_numbers<[1], [0], [0], [1], [0, 0, 1, 1], [], []>} : vector<128x128xf32>, vector<128x32xf32>, vector<128x32xf32> -> vector<128x32xf32>
    %72 = vector.broadcast %70 : vector<128x1xf32> to vector<128x32xf32>
    %73 = arith.mulf %71, %72 : vector<128x32xf32>
    %c1_49 = arith.constant 1 : index
    %c0_50 = arith.constant 0 : index
    %c0_51 = arith.constant 0 : index
    %74 = vector.load %arg9[%c1_49, %c0_50, %c0_51] : memref<3x1x32xf32, #tpu.memory_space<vmem>>, vector<1x1x32xf32>
    %75 = vector.shape_cast %74 : vector<1x1x32xf32> to vector<1x32xf32>
    %76 = vector.broadcast %75 : vector<1x32xf32> to vector<128x32xf32>
    %77 = arith.mulf %73, %76 : vector<128x32xf32>
    %c1_52 = arith.constant 1 : index
    %c0_53 = arith.constant 0 : index
    %c0_54 = arith.constant 0 : index
    %78 = vector.load %arg10[%c1_52, %c0_53, %c0_54] : memref<3x1x32xf32, #tpu.memory_space<vmem>>, vector<1x1x32xf32>
    %79 = vector.shape_cast %78 : vector<1x1x32xf32> to vector<1x32xf32>
    %80 = vector.broadcast %79 : vector<1x32xf32> to vector<128x32xf32>
    %81 = arith.addf %77, %80 : vector<128x32xf32>
    %cst_55 = arith.constant 0.000000e+00 : f32
    %82 = vector.broadcast %cst_55 : f32 to vector<128x32xf32>
    %83 = arith.maximumf %81, %82 : vector<128x32xf32>
    %c2 = arith.constant 2 : index
    %c0_56 = arith.constant 0 : index
    %c0_57 = arith.constant 0 : index
    %84 = vector.load %arg6[%c2, %c0_56, %c0_57] : memref<3x32x32xf32, #tpu.memory_space<vmem>>, vector<1x32x32xf32>
    %85 = vector.shape_cast %84 : vector<1x32x32xf32> to vector<32x32xf32>
    %cst_58 = arith.constant dense<0.000000e+00> : vector<128x32xf32>
    %86 = tpu.matmul %83, %85, %cst_58 {dimension_numbers = #tpu.dot_dimension_numbers<[1], [0], [0], [1], [0, 0, 1, 1], [], []>} : vector<128x32xf32>, vector<32x32xf32>, vector<128x32xf32> -> vector<128x32xf32>
    %c2_59 = arith.constant 2 : index
    %c0_60 = arith.constant 0 : index
    %c0_61 = arith.constant 0 : index
    %87 = vector.load %arg8[%c2_59, %c0_60, %c0_61] : memref<3x32x1xf32, #tpu.memory_space<vmem>>, vector<1x32x1xf32>
    %88 = vector.shape_cast %87 : vector<1x32x1xf32> to vector<32x1xf32>
    %cst_62 = arith.constant dense<0.000000e+00> : vector<128x1xf32>
    %89 = tpu.matmul %86, %88, %cst_62 {dimension_numbers = #tpu.dot_dimension_numbers<[1], [0], [0], [1], [0, 0, 1, 1], [], []>} : vector<128x32xf32>, vector<32x1xf32>, vector<128x1xf32> -> vector<128x1xf32>
    %c2_63 = arith.constant 2 : index
    %c0_64 = arith.constant 0 : index
    %c0_65 = arith.constant 0 : index
    %90 = vector.load %arg7[%c2_63, %c0_64, %c0_65] : memref<3x1x32xf32, #tpu.memory_space<vmem>>, vector<1x1x32xf32>
    %91 = vector.shape_cast %90 : vector<1x1x32xf32> to vector<1x32xf32>
    %cst_66 = arith.constant dense<0.000000e+00> : vector<1x128xf32>
    %92 = tpu.matmul %91, %86, %cst_66 {dimension_numbers = #tpu.dot_dimension_numbers<[1], [1], [0], [0], [0, 0, 1, 0], [], []>} : vector<1x32xf32>, vector<128x32xf32>, vector<1x128xf32> -> vector<1x128xf32>
    %93 = vector.broadcast %89 : vector<128x1xf32> to vector<128x128xf32>
    %94 = vector.broadcast %92 : vector<1x128xf32> to vector<128x128xf32>
    %95 = arith.addf %93, %94 : vector<128x128xf32>
    %c2_67 = arith.constant 2 : index
    %c0_68 = arith.constant 0 : index
    %c0_69 = arith.constant 0 : index
    %96 = vector.load %arg2[%c2_67, %c0_68, %c0_69] : memref<3x128x128xf32, #tpu.memory_space<vmem>>, vector<1x128x128xf32>
    %97 = vector.shape_cast %96 : vector<1x128x128xf32> to vector<128x128xf32>
    %98 = arith.addf %95, %97 : vector<128x128xf32>
    %cst_70 = arith.constant 2.000000e-01 : f32
    %99 = vector.broadcast %cst_70 : f32 to vector<128x128xf32>
    %100 = arith.mulf %99, %98 : vector<128x128xf32>
    %101 = arith.maximumf %98, %100 : vector<128x128xf32>
    %cst_71 = arith.constant dense<0xFF800000> : vector<128xf32>
    %102 = vector.multi_reduction <maximumf>, %101, %cst_71 [1] : vector<128x128xf32> to vector<128xf32>
    %103 = vector.shape_cast %102 : vector<128xf32> to vector<128x1xf32>
    %104 = vector.broadcast %103 : vector<128x1xf32> to vector<128x128xf32>
    %105 = arith.subf %101, %104 : vector<128x128xf32>
    %106 = math.exp %105 : vector<128x128xf32>
    %cst_72 = arith.constant dense<0.000000e+00> : vector<128xf32>
    %107 = vector.multi_reduction <add>, %106, %cst_72 [1] : vector<128x128xf32> to vector<128xf32>
    %108 = vector.shape_cast %107 : vector<128xf32> to vector<128x1xf32>
    %109 = tpu.reciprocal %108 {approx = true} : vector<128x1xf32> -> vector<128x1xf32>
    %cst_73 = arith.constant dense<0.000000e+00> : vector<128x32xf32>
    %110 = tpu.matmul %106, %86, %cst_73 {dimension_numbers = #tpu.dot_dimension_numbers<[1], [0], [0], [1], [0, 0, 1, 1], [], []>} : vector<128x128xf32>, vector<128x32xf32>, vector<128x32xf32> -> vector<128x32xf32>
    %111 = vector.broadcast %109 : vector<128x1xf32> to vector<128x32xf32>
    %112 = arith.mulf %110, %111 : vector<128x32xf32>
    %c2_74 = arith.constant 2 : index
    %c0_75 = arith.constant 0 : index
    %c0_76 = arith.constant 0 : index
    %113 = vector.load %arg9[%c2_74, %c0_75, %c0_76] : memref<3x1x32xf32, #tpu.memory_space<vmem>>, vector<1x1x32xf32>
    %114 = vector.shape_cast %113 : vector<1x1x32xf32> to vector<1x32xf32>
    %115 = vector.broadcast %114 : vector<1x32xf32> to vector<128x32xf32>
    %116 = arith.mulf %112, %115 : vector<128x32xf32>
    %c2_77 = arith.constant 2 : index
    %c0_78 = arith.constant 0 : index
    %c0_79 = arith.constant 0 : index
    %117 = vector.load %arg10[%c2_77, %c0_78, %c0_79] : memref<3x1x32xf32, #tpu.memory_space<vmem>>, vector<1x1x32xf32>
    %118 = vector.shape_cast %117 : vector<1x1x32xf32> to vector<1x32xf32>
    %119 = vector.broadcast %118 : vector<1x32xf32> to vector<128x32xf32>
    %120 = arith.addf %116, %119 : vector<128x32xf32>
    %c0_80 = arith.constant 0 : index
    %c0_81 = arith.constant 0 : index
    %121 = vector.load %arg11[%c0_80, %c0_81] : memref<128x32xf32, #tpu.memory_space<vmem>>, vector<128x32xf32>
    tpu.vector_store %arg11[%c0_80, %c0_81], %120 {strides = array<i32>} : memref<128x32xf32, #tpu.memory_space<vmem>>, vector<128x32xf32>,
    %c0_82 = arith.constant 0 : index
    %c0_83 = arith.constant 0 : index
    %122 = vector.load %arg3[%c0_82, %c0_83] : memref<16x128xf32, #tpu.memory_space<vmem>>, vector<16x128xf32>
    %cst_84 = arith.constant dense<0.000000e+00> : vector<16x32xf32>
    %123 = tpu.matmul %122, %120, %cst_84 {dimension_numbers = #tpu.dot_dimension_numbers<[1], [0], [0], [1], [0, 0, 1, 1], [], []>} : vector<16x128xf32>, vector<128x32xf32>, vector<16x32xf32> -> vector<16x32xf32>
    %c0_85 = arith.constant 0 : index
    %c0_86 = arith.constant 0 : index
    %124 = vector.load %arg12[%c0_85, %c0_86] : memref<16x32xf32, #tpu.memory_space<vmem>>, vector<16x32xf32>
    tpu.vector_store %arg12[%c0_85, %c0_86], %123 {strides = array<i32>} : memref<16x32xf32, #tpu.memory_space<vmem>>, vector<16x32xf32>,
    return
  }
  func.func @transform_0(%arg0: i32) -> (i32, i32) {
    %c0_i32 = arith.constant 0 : i32
    %c0_i32_0 = arith.constant 0 : i32
    return %arg0, %c0_i32 : i32, i32
  }
  func.func @transform_1(%arg0: i32) -> (i32, i32, i32) {
    %c0_i32 = arith.constant 0 : i32
    %c0_i32_0 = arith.constant 0 : i32
    return %c0_i32, %arg0, %arg0 : i32, i32, i32
  }
  func.func @transform_2(%arg0: i32) -> (i32, i32) {
    %c0_i32 = arith.constant 0 : i32
    return %arg0, %arg0 : i32, i32
  }
  func.func @transform_3(%arg0: i32) -> (i32, i32) {
    %c0_i32 = arith.constant 0 : i32
    %c0_i32_0 = arith.constant 0 : i32
    %c0_i32_1 = arith.constant 0 : i32
    return %c0_i32, %c0_i32_0 : i32, i32
  }
  func.func @transform_4(%arg0: i32) -> (i32, i32) {
    %c0_i32 = arith.constant 0 : i32
    %c0_i32_0 = arith.constant 0 : i32
    %c0_i32_1 = arith.constant 0 : i32
    return %c0_i32, %c0_i32_0 : i32, i32
  }
  func.func @transform_5(%arg0: i32) -> (i32, i32, i32) {
    %c0_i32 = arith.constant 0 : i32
    %c0_i32_0 = arith.constant 0 : i32
    %c0_i32_1 = arith.constant 0 : i32
    %c0_i32_2 = arith.constant 0 : i32
    return %c0_i32, %c0_i32_0, %c0_i32_1 : i32, i32, i32
  }
  func.func @transform_6(%arg0: i32) -> (i32, i32, i32) {
    %c0_i32 = arith.constant 0 : i32
    %c0_i32_0 = arith.constant 0 : i32
    %c0_i32_1 = arith.constant 0 : i32
    %c0_i32_2 = arith.constant 0 : i32
    return %c0_i32, %c0_i32_0, %c0_i32_1 : i32, i32, i32
  }
  func.func @transform_7(%arg0: i32) -> (i32, i32, i32) {
    %c0_i32 = arith.constant 0 : i32
    %c0_i32_0 = arith.constant 0 : i32
    %c0_i32_1 = arith.constant 0 : i32
    %c0_i32_2 = arith.constant 0 : i32
    return %c0_i32, %c0_i32_0, %c0_i32_1 : i32, i32, i32
  }
  func.func @transform_8(%arg0: i32) -> (i32, i32, i32) {
    %c0_i32 = arith.constant 0 : i32
    %c0_i32_0 = arith.constant 0 : i32
    %c0_i32_1 = arith.constant 0 : i32
    %c0_i32_2 = arith.constant 0 : i32
    return %c0_i32, %c0_i32_0, %c0_i32_1 : i32, i32, i32
  }
  func.func @transform_9(%arg0: i32) -> (i32, i32, i32) {
    %c0_i32 = arith.constant 0 : i32
    %c0_i32_0 = arith.constant 0 : i32
    %c0_i32_1 = arith.constant 0 : i32
    %c0_i32_2 = arith.constant 0 : i32
    return %c0_i32, %c0_i32_0, %c0_i32_1 : i32, i32, i32
  }
  func.func @transform_10(%arg0: i32) -> (i32, i32) {
    %c0_i32 = arith.constant 0 : i32
    %c0_i32_0 = arith.constant 0 : i32
    return %arg0, %c0_i32 : i32, i32
  }
  func.func @transform_11(%arg0: i32) -> (i32, i32) {
    %c0_i32 = arith.constant 0 : i32
    %c0_i32_0 = arith.constant 0 : i32
    return %arg0, %c0_i32 : i32, i32
  }
}

</mosaic_0001>

<bundles_post_ra>
// kernel: tpu_custom_call.1
= control target key start
LH: loop header
LB: loop body
LE: loop exit
PB: predicated region body
PF: predicated region fallthrough
CT: control target
= control target key end

     0   :  { %s4731_s0 = inlined_call_operand.vmem [shape: f32[256,8], index: 0, kind: input, shape index: {}]   ;;  %s4732_s1 = inlined_call_operand.hbm [shape: f32[3,256,256], index: 1, kind: input, shape index: {}]   ;;  %s4733_s2 = inlined_call_operand.vmem [shape: f32[32,256], index: 2, kind: input, shape index: {}]   ;;  %s4734_s3 = inlined_call_operand.vmem [shape: f32[8,32], index: 3, kind: input, shape index: {}]   ;;  %s4735_s4 = inlined_call_operand.vmem [shape: f32[1,32], index: 4, kind: input, shape index: {}]   ;;  %s4736_s5 = inlined_call_operand.vmem [shape: f32[3,32,32], index: 5, kind: input, shape index: {}]   ;;  %s4737_s6 = inlined_call_operand.vmem [shape: f32[3,1,32], index: 6, kind: input, shape index: {}]   ;;  %s4738_s7 = inlined_call_operand.vmem [shape: f32[3,32,1], index: 7, kind: input, shape index: {}]   ;;  %s4739_s8 = inlined_call_operand.vmem [shape: f32[3,1,32], index: 8, kind: input, shape index: {}]   ;;  %s4740_s9 = inlined_call_operand.vmem [shape: f32[3,1,32], index: 9, kind: input, shape index: {}]   ;;  %s4741_s10 = inlined_call_operand.vmem [shape: f32[256,32], index: 10, kind: output, shape index: {0}]   ;;  %s4742_s11 = inlined_call_operand.hbm [shape: f32[32,32], index: 11, kind: output, shape index: {1}]  }
   0x1   :  { %4752 = sst [smem:[#allocation20_spill]] %s4732_s1 }
   0x2   :  { %4753 = sst [smem:[#allocation21_spill]] %s4742_s11 }
   0x3   :  { %17 = vsyncpa [#allocation3], 0 }
   0x4   :  { %19 = vsyncpa [#allocation3 + $0x1], 0 }
   0x5   :  { %20 = vsyncpa [#allocation4], 0 }
   0x6   :  { %22 = vsyncpa [#allocation4 + $0x1], 0  ;;  %s3623_s17 = smov 0   ;;  %s3625_s18 = smov 0  }
   0x7   :  { %s3627_s19 = smov 0   ;;  %s3629_s20 = smov 0  }
   0x8   :  { %s3631_s21 = smov 0   ;;  %s3633_s22 = smov 0  }
   0x9   :  { %s3635_s23 = smov 0  }
   0xa LB: > { %4754 = sst [smem:[#allocation12_spill]] %s3527_s17  ;;  %s3657_s24 = sadd.s32 4294967295, %s3551_s23   ;;  %s3551_s23 = sphi %s3635_s23, %s4771_s23   ;;  %s3547_s22 = sphi %s3633_s22, %s4775_s22   ;;  %s3543_s21 = sphi %s3631_s21, %s4779_s21   ;;  %s3539_s20 = sphi %s3629_s20, %s4778_s20   ;;  %s3535_s19 = sphi %s3627_s19, %s4773_s19   ;;  %s3531_s18 = sphi %s3625_s18, %s4777_s18   ;;  %s3527_s17 = sphi %s3623_s17, %s4776_s17  }
   0xb   : > { %4755 = sst [smem:[#allocation13_spill]] %s3535_s19  ;;  %s2923_s25 = sadd.s32 4294967294, %s3551_s23  }
   0xc   : > { %4756 = sst [smem:[#allocation14_spill]] %s3547_s22  ;;  %s3661_s26 = sadd.s32 1, %s3551_s23  }
   0xd   : > { %4757 = sst [smem:[#allocation15_spill]] %s3661_s26  ;;  %s63_s27 = sadd.s32 1, %s3547_s22 }
   0xe   : > { %s58_s28 = ssub.s32 %s3551_s23, %s3661_s26  ;;  %p70_p0 = scmp.ne.s32.totalorder %s3547_s22, %s3543_s21 }
   0xf   : > { %s60_s29 = sor.u32 %s58_s28, %s58_s28  ;;  %p71_p1 = scmp.eq.s32.totalorder %s3551_s23, 0 }
  0x10   : > { %p61_p2 = scmp.eq.s32.totalorder %s60_s29, 0  ;;  %p76_p3 = scmp.ne.s32.totalorder %s3543_s21, %s3539_s20 }
  0x11   : > { %p3670_p4 = por %p71_p1, %p70_p0  ;;  %p77_p5 = scmp.eq.s32.totalorder %s3657_s24, 0 }
  0x12   : > { %s3676_s12 = scalar_select %p61_p2, %s3547_s22, %s63_s27  }
  0x13   : > { %p3678_p6 = por %p77_p5, %p76_p3  ;;  %p288_p7 = scmp.eq.s32.totalorder %s58_s28, 0 }
  0x14   : > { %4759 = sst [smem:[#allocation16_spill]] %s3676_s12  ;;  %s290_s14 = sadd.s32 1, %s3535_s19 }
  0x15   : > { %p300_p8 = scmp.ne.s32.totalorder %s3535_s19, %s3531_s18  ;;  %p301_p9 = scmp.eq.s32.totalorder %s3657_s24, 1 }
  0x16   : > { %s3686_s15 = scalar_select %p288_p7, %s3535_s19, %s290_s14  }
  0x17   : > { %p306_p10 = scmp.ne.s32.totalorder %s3531_s18, %s3527_s17  ;;  %p307_p11 = scmp.eq.s32.totalorder %s2923_s25, 1 }
  0x18   : > { %4761 = sst [smem:[#allocation17_spill]] %s3686_s15  ;;  %p3691_p12 = por %p301_p9, %p300_p8 }
  0x19   : > { %p3695_p13 = por %p307_p11, %p306_p10  ;;  %p2925_p0 = scmp.ge.s32.totalorder %s3551_s23, 2 }
  0x1a   : > { %s4762_s16 = scalar_select %p3691_p12, 1, 0 }
  0x1b   : > { %s4764_s20 = scalar_select %p3695_p13, 1, 0 }
  0x1c   : > { %4763 = sst [smem:[#allocation18_spill]] %s4762_s16  ;;  %344 = sbr.rel (%p2925_p0) target bundleno = 56 (0x38), region = 44 }
  0x1d   : > { %4765 = sst [smem:[#allocation19_spill]] %s4764_s20 }
  0x21   : > { %s3703_s27 = sand.u32 1, %s3547_s22   ;;  %s3164_s25 = sshll.u32 %s3551_s23, 5 }
  0x22   : > { %s3175_s28 = smul.u32 384, %s3703_s27  ;;  %s366_s29 = sadd.s32 %s3551_s23, %s3164_s25 }
  0x23   : > { %s2928_s14 = sshll.u32 %s366_s29, 3  ;;  %s4766_s1 = sld [smem:[#allocation20_spill]] }
  0x24   : > { %s361_s26 = scalar_lea.vmem [#allocation2], %s3175_s28  ;;  %s3553_s16 = smov 8192  }
  0x25   : > { %s383_s20 = sshll.u32 %s361_s26, 4  ;;  %3178 = sst [smem:[#allocation8]] (%p3670_p4), %s3553_s16  ;;  %s384_s20 = int_to_ptr.vmem [resolvable:$true] %s383_s20 }
  0x26   : > { %s3177_s17 = scalar_select %p3670_p4, [#allocation0], [#allocation9] }
  0x27   : > { %s3554_s25 = smov 2048   ;;  %s3555_s12 = smov 16  }
  0x28   : > { %s373_s22 = sld [smem:[%s3177_s17]]   ;;  %s3556_s15 = smov 256  }
  0x29   : > { %s368_s19 = scalar_lea.hbm %s4766_s1, %s2928_s14  ;;  %3179 = sst [smem:[#allocation8 + $0x1]] (%p3670_p4), %s3554_s25 }
  0x2a   : > { %s381_s11 = sshll.u32 %s368_s19, 4  ;;  %3180 = sst [smem:[#allocation8 + $0x2]] (%p3670_p4), %s3555_s12  ;;  %s382_s11 = int_to_ptr.hbm [resolvable:$true] %s381_s11 }
  0x2b   : > { %3181 = sst [smem:[#allocation8 + $0x3]] (%p3670_p4), %s3556_s15  ;;  %s3557_s26 = smov 128  }
  0x2c   : > { %3182 = sst [smem:[#allocation8 + $0x4]] (%p3670_p4), %s3557_s26  ;;  %s3558_s17 = smov 8  }
  0x2d   : > { %3183 = sst [smem:[#allocation8 + $0x5]] (%p3670_p4), %s3558_s17  ;;  %s358_s29 = scalar_lea.sflag [#allocation3], %s3703_s27 }
  0x2e   : > { %s2929_s19 = sshll.u32 %s373_s22, 26  ;;  %s3559_s14 = smov [#allocation7]  }
  0x2f   : > { %s2930_s28 = sadd.s32 134217728, %s2929_s19  ;;  %405 = sbr.rel (!%p3670_p4) target bundleno = 56 (0x38), region = 56 }
  0x30   : > { %3184 = dma.general (%p3670_p4), %s382_s11, 6144, %s384_s20, %s358_s29, %s3559_s14, [#allocation8], %s2930_s28, 0  }
  0x31   : > { %s2931_s16 = sshll.u32 (%p3670_p4), %s3703_s27, 4  ;;  %s3165_s25 = sshll.u32 (%p3670_p4), %s3551_s23, 2 }
  0x32   : > { %s412_s12 = sadd.s32 (%p3670_p4), %s3551_s23, %s3165_s25  ;;  %s409_s19 = scalar_lea.vmem (%p3670_p4), [#allocation5], %s2931_s16 }
  0x33   : > { %s2934_s15 = sshll.u32 (%p3670_p4), %s412_s12, 3 }
  0x34   : > { %s414_s1 = scalar_lea.vmem %s4733_s2, %s2934_s15 }
  0x35   : > { %v445_v0 = vld [vmem:[%s414_s1] sm:$0xff]  ;;  %v447_v1 = vld [vmem:[%s414_s1 + $0x10] sm:$0xff] }
  0x36   : > { %446 = vst [vmem:[%s409_s19] sm:$0xff] %v445_v0 }
  0x37   : > { %448 = vst [vmem:[%s409_s19 + $0x8] sm:$0xff] %v447_v1 }
  0x38 PF: > { %p2935_p1 = scmp.ge.s32.totalorder %s3551_s23, 1  ;;  %p453_p2 = scmp.lt.s32.totalorder %s3551_s23, 3 }
  0x3a   : > { %p454_p3 = pnand %p2935_p1, %p453_p2 }
  0x3b   : > { %s3739_s11 = sand.u32 (!%p454_p3), 1, %s3543_s21  }
  0x3c   : > { %457 = sbr.rel (%p454_p3) target bundleno = 2973 (0xb9d), region = 94  ;;  %s460_s20 = scalar_lea.sflag (!%p454_p3), [#allocation3], %s3739_s11 }
  0x3d   : > { %s3176_s30 = smul.u32 (!%p454_p3), 384, %s3739_s11 }
  0x3f   : > { %s3743_s1 = scalar_lea.vmem (!%p454_p3), [#allocation2], %s3176_s30 }
  0x41   : > { %3518 = dma.done.wait (%p3678_p6), %s460_s20, 6144  }
  0x42   : > { %3520 = vsyncadd (%p3678_p6), %s460_s20, 4294961152  ;;  %s3750_s27 = sshll.u32 %s3657_s24, 4  ;;  %vm560_vm0 = vcmask 64512   ;;  %v555_v2 = vld [vmem:[%s4734_s3] sm:$0xff]  ;;  %v677_v15 = vld [vmem:[%s4736_s5 + $0x18] sm:$0xff]  ;;  %vm678_vm1 = vcmask 261120  }
  0x43   : > { %p525_p4 = scmp.lt.s32.totalorder %s3750_s27, 31  ;;  %624 = vmatpush.msra.mxu0 %v555_v2  ;;  %v676_v16 = vld [vmem:[%s4736_s5 + $0x10] sm:$0xff]  ;;  %739 = vmatpush.msra.mxu1 %v677_v15  ;;  %v675_v17 = vld [vmem:[%s4736_s5 + $0x8] sm:$0xff]  ;;  %v674_v19 = vld [vmem:[%s4736_s5] sm:$0xff]  ;;  %s521_s19 = sand.u32 1, %s3531_s18  }
  0x44   : > { %3167 = vmatpush.msra.mxu2 %v677_v15  ;;  %v3262_v23 = vld [vmem:[%s4735_s4] ss:$0 sm:$0xff]  ;;  %v795_v48 = vld [vmem:[%s4738_s7 + $0x18] sm:$0xff]  ;;  %v794_v49 = vld [vmem:[%s4738_s7 + $0x10] sm:$0xff]  ;;  %s2937_s30 = sshll.u32 %s521_s19, 4  ;;  %s2772_s25 = scalar_lea.sflag [#allocation4], %s521_s19 }
  0x45   : > { %s3754_s17 = scalar_select %p525_p4, %s3750_s27, 31  ;;  %740 = vmatpush.msra.mxu1 %v676_v16  ;;  %v793_v50 = vld [vmem:[%s4738_s7 + $0x8] sm:$0xff]  ;;  %v792_v52 = vld [vmem:[%s4738_s7] sm:$0xff] }
  0x46   : > { %3168 = vmatpush.msra.mxu2 %v676_v16  ;;  %s523_s29 = scalar_lea.vmem [#allocation6], %s2937_s30 }
  0x47   : > { %s2939_s28 = sshll.u32 %s3754_s17, 3  ;;  %741 = vmatpush.msra.mxu1 %v675_v17  ;;  %s2936_s17 = sshll.u32 %s3739_s11, 4 }
  0x48   : > { %s3762_s16 = scalar_lea.vmem %s4731_s0, %s2939_s28  ;;  %3169 = vmatpush.msra.mxu2 %v675_v17  ;;  %s4590_s22 = scalar_lea.vmem %s4741_s10, %s2939_s28 }
  0x49   : > { %v539_v3 = vld [vmem:[%s3762_s16] sm:$0xff]  ;;  %v540_v4 = vld [vmem:[%s3762_s16 + $0x8] sm:$0xff]  ;;  %v541_v5 = vld [vmem:[%s3762_s16 + $0x10] sm:$0xff]  ;;  %742 = vmatpush.msra.mxu1 %v674_v19  ;;  %s472_s28 = scalar_lea.vmem [#allocation5], %s2936_s17 }
  0x4a   : > { %2942 = vmatmul.msk.f32.vlgmr.msra.gmra.mxu0 %vm560_vm0, %v539_v3  ;;  %v542_v6 = vld [vmem:[%s3762_s16 + $0x18] sm:$0xff]  ;;  %v543_v7 = vld [vmem:[%s3762_s16 + $0x20] sm:$0xff]  ;;  %v544_v8 = vld [vmem:[%s3762_s16 + $0x28] sm:$0xff]  ;;  %3170 = vmatpush.msra.mxu2 %v674_v19 }
  0x4b   : > { %v545_v9 = vld [vmem:[%s3762_s16 + $0x30] sm:$0xff]  ;;  %v546_v10 = vld [vmem:[%s3762_s16 + $0x38] sm:$0xff]  ;;  %v547_v11 = vld [vmem:[%s3762_s16 + $0x40] sm:$0xff] }
  0x4c   : > { %v548_v12 = vld [vmem:[%s3762_s16 + $0x48] sm:$0xff]  ;;  %v549_v13 = vld [vmem:[%s3762_s16 + $0x50] sm:$0xff]  ;;  %v550_v14 = vld [vmem:[%s3762_s16 + $0x58] sm:$0xff]  ;;  %856 = vmatpush.msrb.mxu2 %v795_v48 }
  0x4d   : > { %v551_v18 = vld [vmem:[%s3762_s16 + $0x60] sm:$0xff]  ;;  %v552_v20 = vld [vmem:[%s3762_s16 + $0x68] sm:$0xff]  ;;  %v553_v21 = vld [vmem:[%s3762_s16 + $0x70] sm:$0xff] }
  0x4e   : > { %v554_v22 = vld [vmem:[%s3762_s16 + $0x78] sm:$0xff]  ;;  %857 = vmatpush.msrb.mxu2 %v794_v49  ;;  %s4768_s16 = sld [smem:[#allocation21_spill]] }
  0x50   : > { %858 = vmatpush.msrb.mxu2 %v793_v50 }
  0x52   : > { %2943 = vmatmul.msk.f32.gmra.mxu0 %vm560_vm0, %v540_v4  ;;  %859 = vmatpush.msrb.mxu2 %v792_v52 }
  0x54   : > { %s2787_s24 = scalar_lea.hbm %s4768_s16, %s3750_s27  ;;  %s3481_s17 = scalar_lea.hbm %s4768_s16, 32 }
  0x55   : > { %s2790_s13 = sshll.u32 %s2787_s24, 4  ;;  %s2791_s13 = int_to_ptr.hbm [resolvable:$true] %s2790_s13 }
  0x56   : > { %s3475_s12 = sshra.s32 %s2791_s13, 4  ;;  %s3476_s12 = int_to_ptr.hbm [resolvable:$true] %s3475_s12 }
  0x57   : > { %s3477_s15 = scalar_lea.hbm %s3476_s12, 16  ;;  %p3482_p8 = scmp.lt.s32.totalorder %s3476_s12, %s4768_s16 }
  0x58   : > { %p3478_p5 = scmp.ne.s32.totalorder %s3476_s12, %s3477_s15  ;;  %p3483_p9 = scmp.lt.s32.totalorder %s3481_s17, %s3477_s15 }
  0x5a   : > { %2944 = vmatmul.msk.f32.gmra.mxu0 %vm560_vm0, %v541_v5  ;;  %p3479_p6 = pnand %p3478_p5, %p3691_p12  ;;  %p3484_p10 = por %p3483_p9, %p3482_p8 }
  0x5c   : > { %p3480_p7 = pneg %p3479_p6 }
  0x5e   : > { %p3485_p11 = pnand %p3484_p10, %p3480_p7 }
  0x62   : > { %2945 = vmatmul.msk.f32.gmra.mxu0 %vm560_vm0, %v542_v6 }
  0x6a   : > { %2946 = vmatmul.msk.f32.gmra.mxu0 %vm560_vm0, %v543_v7 }
  0x72   : > { %2947 = vmatmul.msk.f32.gmra.mxu0 %vm560_vm0, %v544_v8  ;;  %v3560_v8 = vmov 0  }
  0x73   : > { %3259 = vset.pattern.permute.xlu0 %v3560_v8  ;;  %3260 = vset.pattern.permute.xlu1 %v3560_v8 }
  0x74   : > { %3261 = vset.pattern.permute.xlu2 %v3560_v8 }
  0x7a   : > { %2948 = vmatmul.msk.f32.gmra.mxu0 %vm560_vm0, %v545_v9 }
  0x82   : > { %2949 = vmatmul.msk.f32.gmra.mxu0 %vm560_vm0, %v546_v10 }
  0x8a   : > { %2950 = vmatmul.msk.f32.gmra.mxu0 %vm560_vm0, %v547_v11 }
  0x92   : > { %2951 = vmatmul.msk.f32.gmra.mxu0 %vm560_vm0, %v548_v12 }
  0x9a   : > { %2952 = vmatmul.msk.f32.gmra.mxu0 %vm560_vm0, %v549_v13 }
  0xa2   : > { %2953 = vmatmul.msk.f32.gmra.mxu0 %vm560_vm0, %v550_v14 }
  0xaa   : > { %2954 = vmatmul.msk.f32.gmra.mxu0 %vm560_vm0, %v551_v18 }
  0xb2   : > { %2955 = vmatmul.msk.f32.gmra.mxu0 %vm560_vm0, %v552_v20  ;;  %v909_v20 = vld [vmem:[%s4737_s6] sm:$0x1] }
  0xba   : > { %2956 = vmatmul.msk.f32.gmra.mxu0 %vm560_vm0, %v553_v21 }
  0xc2   : > { %2957 = vmatmul.msk.f32.gmra.mxu0 %vm560_vm0, %v554_v22 }
  0xc7   : > { %v626_v24 = vpop.f32.mrf.mxu0 }
  0xc8   : > { %v627_v25 = vadd.f32 %v3262_v23, %v626_v24 }
  0xca   : > { %2958 = vmatmul.msk.f32.vlgmr.msra.gmra.mxu1 %vm678_vm1, %v627_v25 }
  0xcf   : > { %v629_v26 = vpop.f32.mrf.mxu0 }
  0xd0   : > { %v630_v27 = vadd.f32 %v3262_v23, %v629_v26 }
  0xd2   : > { %2959 = vmatmul.msk.f32.gmra.mxu1 %vm678_vm1, %v630_v27 }
  0xd7   : > { %v632_v28 = vpop.f32.mrf.mxu0 }
  0xd8   : > { %v633_v29 = vadd.f32 %v3262_v23, %v632_v28 }
  0xda   : > { %2960 = vmatmul.msk.f32.gmra.mxu1 %vm678_vm1, %v633_v29 }
  0xdf   : > { %v635_v30 = vpop.f32.mrf.mxu0 }
  0xe0   : > { %v636_v31 = vadd.f32 %v3262_v23, %v635_v30 }
  0xe2   : > { %2961 = vmatmul.msk.f32.gmra.mxu1 %vm678_vm1, %v636_v31 }
  0xe7   : > { %v638_v32 = vpop.f32.mrf.mxu0 }
  0xe8   : > { %v639_v33 = vadd.f32 %v3262_v23, %v638_v32 }
  0xea   : > { %2962 = vmatmul.msk.f32.gmra.mxu1 %vm678_vm1, %v639_v33  ;;  %v1030_v33 = vld [vmem:[%s3743_s1] sm:$0xff] }
  0xef   : > { %v641_v34 = vpop.f32.mrf.mxu0 }
  0xf0   : > { %v642_v35 = vadd.f32 %v3262_v23, %v641_v34  ;;  %v1031_v34 = vld [vmem:[%s3743_s1 + $0x8] sm:$0xff] }
  0xf2   : > { %2963 = vmatmul.msk.f32.gmra.mxu1 %vm678_vm1, %v642_v35  ;;  %v1032_v35 = vld [vmem:[%s3743_s1 + $0x10] sm:$0xff] }
  0xf7   : > { %v644_v36 = vpop.f32.mrf.mxu0 }
  0xf8   : > { %v645_v37 = vadd.f32 %v3262_v23, %v644_v36 }
  0xfa   : > { %2964 = vmatmul.msk.f32.gmra.mxu1 %vm678_vm1, %v645_v37 }
  0xff   : > { %v647_v38 = vpop.f32.mrf.mxu0 }
 0x100   : > { %v648_v39 = vadd.f32 %v3262_v23, %v647_v38 }
 0x102   : > { %2965 = vmatmul.msk.f32.gmra.mxu1 %vm678_vm1, %v648_v39 }
 0x107   : > { %v650_v40 = vpop.f32.mrf.mxu0 }
 0x108   : > { %v651_v41 = vadd.f32 %v3262_v23, %v650_v40 }
 0x10a   : > { %2966 = vmatmul.msk.f32.gmra.mxu1 %vm678_vm1, %v651_v41 }
 0x10f   : > { %v653_v42 = vpop.f32.mrf.mxu0 }
 0x110   : > { %v654_v43 = vadd.f32 %v3262_v23, %v653_v42 }
 0x112   : > { %2967 = vmatmul.msk.f32.vlgmr.msra.gmra.mxu2 %vm678_vm1, %v654_v43 }
 0x117   : > { %v656_v44 = vpop.f32.mrf.mxu0 }
 0x118   : > { %v657_v45 = vadd.f32 %v3262_v23, %v656_v44 }
 0x11a   : > { %2968 = vmatmul.msk.f32.gmra.mxu2 %vm678_vm1, %v657_v45  ;;  %v1036_v45 = vld [vmem:[%s3743_s1 + $0x30] sm:$0xff] }
 0x11f   : > { %v659_v46 = vpop.f32.mrf.mxu0 }
 0x120   : > { %v660_v47 = vadd.f32 %v3262_v23, %v659_v46 }
 0x122   : > { %2969 = vmatmul.msk.f32.gmra.mxu2 %vm678_vm1, %v660_v47  ;;  %v1034_v47 = vld [vmem:[%s3743_s1 + $0x20] sm:$0xff] }
 0x127   : > { %v662_v51 = vpop.f32.mrf.mxu0 }
 0x128   : > { %v663_v53 = vadd.f32 %v3262_v23, %v662_v51 }
 0x12a   : > { %2970 = vmatmul.msk.f32.gmra.mxu2 %vm678_vm1, %v663_v53 }
 0x12f   : > { %v665_v54 = vpop.f32.mrf.mxu0 }
 0x130   : > { %v666_v55 = vadd.f32 %v3262_v23, %v665_v54 }
 0x132   : > { %2971 = vmatmul.msk.f32.gmra.mxu2 %vm678_vm1, %v666_v55 }
 0x137   : > { %v668_v56 = vpop.f32.mrf.mxu0 }
 0x138   : > { %v669_v57 = vadd.f32 %v3262_v23, %v668_v56 }
 0x13a   : > { %2972 = vmatmul.msk.f32.gmra.mxu2 %vm678_vm1, %v669_v57 }
 0x13f   : > { %v671_v58 = vpop.f32.mrf.mxu0 }
 0x140   : > { %v672_v59 = vadd.f32 %v3262_v23, %v671_v58 }
 0x142   : > { %2973 = vmatmul.msk.f32.gmra.mxu2 %vm678_vm1, %v672_v59 }
 0x147   : > { %v3842_v60 = vpop.f32.mrf.mxu1 }
 0x14a   : > { %2974 = vmatmul.msk.f32.vlgmr.msrb.gmra.mxu2 %vm678_vm1, %v3842_v60 }
 0x14f   : > { %v3846_v61 = vpop.f32.mrf.mxu1 }
 0x152   : > { %2975 = vmatmul.msk.f32.gmra.mxu2 %vm678_vm1, %v3846_v61 }
 0x157   : > { %v3850_v62 = vpop.f32.mrf.mxu1 }
 0x15a   : > { %2976 = vmatmul.msk.f32.gmra.mxu2 %vm678_vm1, %v3850_v62 }
 0x15f   : > { %v3854_v63 = vpop.f32.mrf.mxu1 }
 0x162   : > { %2977 = vmatmul.msk.f32.gmra.mxu2 %vm678_vm1, %v3854_v63 }
 0x167   : > { %v3858_v0 = vpop.f32.mrf.mxu1 }
 0x16a   : > { %2978 = vmatmul.msk.f32.gmra.mxu2 %vm678_vm1, %v3858_v0 }
 0x16f   : > { %v3862_v1 = vpop.f32.mrf.mxu1 }
 0x172   : > { %2979 = vmatmul.msk.f32.gmra.mxu2 %vm678_vm1, %v3862_v1 }
 0x177   : > { %v3866_v2 = vpop.f32.mrf.mxu1 }
 0x17a   : > { %2980 = vmatmul.msk.f32.gmra.mxu2 %vm678_vm1, %v3866_v2 }
 0x17f   : > { %v3870_v3 = vpop.f32.mrf.mxu1 }
 0x182   : > { %2981 = vmatmul.msk.f32.gmra.mxu2 %vm678_vm1, %v3870_v3 }
 0x187   : > { %v768_v4 = vpop.f32.mrf.mxu1 }
 0x18a   : > { %2982 = vmatmul.msk.f32.gmra.mxu2 %vm678_vm1, %v768_v4 }
 0x195   : > { %v771_v5 = vpop.f32.mrf.mxu2 }
 0x196   : > { %2983 = vmatmul.msk.f32.gmra.mxu2 %vm678_vm1, %v771_v5 }
 0x19d   : > { %v774_v6 = vpop.f32.mrf.mxu2 }
 0x19e   : > { %2984 = vmatmul.msk.f32.gmra.mxu2 %vm678_vm1, %v774_v6 }
 0x1a5   : > { %v777_v7 = vpop.f32.mrf.mxu2 }
 0x1a6   : > { %2985 = vmatmul.msk.f32.gmra.mxu2 %vm678_vm1, %v777_v7 }
 0x1ad   : > { %v780_v9 = vpop.f32.mrf.mxu2 }
 0x1ae   : > { %2986 = vmatmul.msk.f32.gmra.mxu2 %vm678_vm1, %v780_v9 }
 0x1b5   : > { %v783_v10 = vpop.f32.mrf.mxu2 }
 0x1b6   : > { %2987 = vmatmul.msk.f32.gmra.mxu2 %vm678_vm1, %v783_v10 }
 0x1bd   : > { %v786_v11 = vpop.f32.mrf.mxu2 }
 0x1be   : > { %2988 = vmatmul.msk.f32.gmra.mxu2 %vm678_vm1, %v786_v11 }
 0x1c5   : > { %v789_v12 = vpop.f32.mrf.mxu2 }
 0x1c6   : > { %2989 = vmatmul.msk.f32.gmra.mxu2 %vm678_vm1, %v789_v12  ;;  %2990 = vmatpush.xpose.msk.msra.mxu3 %vm678_vm1, %v789_v12 }
 0x1ca   : > { %2991 = vmatpush.xpose.msk.msra.mxu3 %vm678_vm1, %v786_v11 }
 0x1cd   : > { %v861_v13 = vpop.f32.mrf.mxu2 }
 0x1ce   : > { %2992 = vmatpush.xpose.msk.msra.mxu3 %vm678_vm1, %v783_v10  ;;  %935 = vperm.xlu0 %3259, %v861_v13  }
 0x1d2   : > { %2993 = vmatpush.xpose.msk.msra.mxu3 %vm678_vm1, %v780_v9 }
 0x1d5   : > { %v864_v14 = vpop.f32.mrf.mxu2 }
 0x1d6   : > { %2994 = vmatpush.xpose.msk.msra.mxu3 %vm678_vm1, %v777_v7  ;;  %940 = vperm.xlu0 %3259, %v864_v14  }
 0x1da   : > { %2995 = vmatpush.xpose.msk.msra.mxu3 %vm678_vm1, %v774_v6 }
 0x1dd   : > { %v867_v15 = vpop.f32.mrf.mxu2 }
 0x1de   : > { %2996 = vmatpush.xpose.msk.msra.mxu3 %vm678_vm1, %v771_v5  ;;  %945 = vperm.xlu1 %3260, %v867_v15  }
 0x1e2   : > { %2997 = vmatpush.xpose.msk.msra.mxu3 %vm678_vm1, %v768_v4 }
 0x1e5   : > { %v870_v16 = vpop.f32.mrf.mxu2 }
 0x1e6   : > { %950 = vperm.xlu1 %3260, %v870_v16   ;;  %2998 = vmatpush.xpose.msk.msra.mxu3 %vm678_vm1, %v3870_v3  ;;  %v1040_v16 = vld [vmem:[%s3743_s1 + $0x50] sm:$0xff] }
 0x1ea   : > { %2999 = vmatpush.xpose.msk.msra.mxu3 %vm678_vm1, %v3866_v2 }
 0x1ed   : > { %v873_v17 = vpop.f32.mrf.mxu2 }
 0x1ee   : > { %955 = vperm.xlu2 %3261, %v873_v17   ;;  %3000 = vmatpush.xpose.msk.msra.mxu3 %vm678_vm1, %v3862_v1 }
 0x1f2   : > { %3001 = vmatpush.xpose.msk.msra.mxu3 %vm678_vm1, %v3858_v0 }
 0x1f5   : > { %v876_v18 = vpop.f32.mrf.mxu2 }
 0x1f6   : > { %960 = vperm.xlu2 %3261, %v876_v18   ;;  %3002 = vmatpush.xpose.msk.msra.mxu3 %vm678_vm1, %v3854_v63 }
 0x1fa   : > { %3003 = vmatpush.xpose.msk.msra.mxu3 %vm678_vm1, %v3850_v62 }
 0x1fd   : > { %v879_v19 = vpop.f32.mrf.mxu2 }
 0x1fe   : > { %965 = vperm.xlu1 %3260, %v879_v19   ;;  %3004 = vmatpush.xpose.msk.msra.mxu3 %vm678_vm1, %v3846_v61 }
 0x202   : > { %3005 = vmatpush.xpose.msk.msra.mxu3 %vm678_vm1, %v3842_v60 }
 0x205   : > { %v882_v21 = vpop.f32.mrf.mxu2  ;;  %3006 = vmatmul.msk.f32.vlgmr.msra.gmra.mxu3 %vm678_vm1, %v909_v20 }
 0x206   : > { %1222 = vmatpush.msrb.mxu3 %v789_v12  ;;  %970 = vperm.xlu1 %3260, %v882_v21   ;;  %v1039_v21 = vld [vmem:[%s3743_s1 + $0x48] sm:$0xff] }
 0x208   : > { %1223 = vmatpush.msrb.mxu3 %v786_v11  ;;  %v1037_v11 = vld [vmem:[%s3743_s1 + $0x38] sm:$0xff] }
 0x20a   : > { %1224 = vmatpush.msrb.mxu3 %v783_v10 }
 0x20c   : > { %1225 = vmatpush.msrb.mxu3 %v780_v9 }
 0x20d   : > { %v885_v22 = vpop.f32.mrf.mxu2 }
 0x20e   : > { %1226 = vmatpush.msrb.mxu3 %v777_v7  ;;  %975 = vperm.xlu2 %3261, %v885_v22  }
 0x210   : > { %1227 = vmatpush.msrb.mxu3 %v774_v6 }
 0x212   : > { %1228 = vmatpush.msrb.mxu3 %v771_v5  ;;  %v1033_v5 = vld [vmem:[%s3743_s1 + $0x18] sm:$0xff] }
 0x214   : > { %1229 = vmatpush.msrb.mxu3 %v768_v4 }
 0x216   : > { %1230 = vmatpush.msrb.mxu3 %v3870_v3 }
 0x218   : > { %1231 = vmatpush.msrb.mxu3 %v3866_v2 }
 0x219   : > { %v888_v23 = vpop.f32.mrf.mxu2 }
 0x21a   : > { %1232 = vmatpush.msrb.mxu3 %v3862_v1  ;;  %980 = vperm.xlu0 %3259, %v888_v23  }
 0x21c   : > { %1233 = vmatpush.msrb.mxu3 %v3858_v0 }
 0x21e   : > { %1234 = vmatpush.msrb.mxu3 %v3854_v63 }
 0x220   : > { %1235 = vmatpush.msrb.mxu3 %v3850_v62 }
 0x221   : > { %v891_v24 = vpop.f32.mrf.mxu2 }
 0x222   : > { %1236 = vmatpush.msrb.mxu3 %v3846_v61  ;;  %985 = vperm.xlu2 %3261, %v891_v24  }
 0x224   : > { %1237 = vmatpush.msrb.mxu3 %v3842_v60  ;;  %v1035_v60 = vld [vmem:[%s3743_s1 + $0x28] sm:$0xff] }
 0x229   : > { %v894_v25 = vpop.f32.mrf.mxu2 }
 0x231   : > { %v897_v26 = vpop.f32.mrf.mxu2 }
 0x232   : > { %995 = vperm.xlu1 %3260, %v897_v26  }
 0x239   : > { %v900_v2 = vpop.f32.mrf.mxu2 }
 0x240   : > { %v936_v28 = vpop.permute.xlu0 %935 }
 0x241   : > { %v903_v3 = vpop.f32.mrf.mxu2 }
 0x248   : > { %v941_v32 = vpop.permute.xlu0 %940  ;;  %v956_v36 = vpop.permute.xlu2 %955 }
 0x250   : > { %v946_v27 = vpop.permute.xlu1 %945  ;;  %v961_v56 = vpop.permute.xlu2 %960 }
 0x258   : > { %v951_v29 = vpop.permute.xlu1 %950 }
 0x268   : > { %v976_v6 = vpop.permute.xlu2 %975 }
 0x270   : > { %v966_v40 = vpop.permute.xlu1 %965 }
 0x278   : > { %v971_v8 = vpop.permute.xlu1 %970 }
 0x27c   : > { %v986_v12 = vpop.permute.xlu2 %985 }
 0x288   : > { %v930_v30 = vpop.f32.mrf.mxu3 }
 0x289   : > { %v3918_v31 = vperm.slane %v930_v30, 0 }
 0x28b   : > { %v1014_v37 = vadd.f32 %v3918_v31, %v936_v28  ;;  %v1015_v38 = vadd.f32 %v3918_v31, %v941_v32  ;;  %v1016_v39 = vadd.f32 %v3918_v31, %v946_v27  ;;  %v1020_v44 = vadd.f32 %v3918_v31, %v966_v40  ;;  %v1038_v27 = vld [vmem:[%s3743_s1 + $0x40] sm:$0xff]  ;;  %v906_v40 = vpop.f32.mrf.mxu2 }
 0x28c   : > { %v1018_v46 = vadd.f32 %v3918_v31, %v956_v36  ;;  %v1019_v59 = vadd.f32 %v3918_v31, %v961_v56  ;;  %v1017_v4 = vadd.f32 %v3918_v31, %v951_v29  ;;  %v1021_v10 = vadd.f32 %v3918_v31, %v971_v8  ;;  %v981_v17 = vpop.permute.xlu0 %980 }
 0x28d   : > { %v1046_v41 = vadd.f32 %v1030_v33, %v1014_v37  ;;  %v1047_v42 = vadd.f32 %v1031_v34, %v1015_v38  ;;  %v1048_v43 = vadd.f32 %v1032_v35, %v1016_v39  ;;  %v1052_v54 = vadd.f32 %v1036_v45, %v1020_v44  ;;  %v1042_v35 = vld [vmem:[%s3743_s1 + $0x60] sm:$0xff] }
 0x28e   : > { %v1050_v55 = vadd.f32 %v1034_v47, %v1018_v46  ;;  %v1051_v63 = vadd.f32 %v1035_v60, %v1019_v59  ;;  %v1049_v7 = vadd.f32 %v1033_v5, %v1017_v4  ;;  %v1024_v13 = vadd.f32 %v3918_v31, %v986_v12 }
 0x28f   : > { %v1062_v48 = vmul.f32 0.2, %v1046_v41  ;;  %v1063_v49 = vmul.f32 0.2, %v1047_v42  ;;  %v1064_v50 = vmul.f32 0.2, %v1048_v43  ;;  %v1053_v15 = vadd.f32 %v1037_v11, %v1021_v10 }
 0x290   : > { %v1068_v57 = vmul.f32 0.2, %v1052_v54  ;;  %v1066_v58 = vmul.f32 0.2, %v1050_v55  ;;  %v1067_v0 = vmul.f32 0.2, %v1051_v63  ;;  %v1056_v18 = vadd.f32 %v1040_v16, %v1024_v13 }
 0x291   : > { %v3930_v51 = vmax.f32 %v1046_v41, %v1062_v48  ;;  %v3932_v52 = vmax.f32 %v1047_v42, %v1063_v49  ;;  %v3934_v53 = vmax.f32 %v1048_v43, %v1064_v50  ;;  %v1065_v9 = vmul.f32 0.2, %v1049_v7  ;;  %v1044_v11 = vld [vmem:[%s3743_s1 + $0x70] sm:$0xff] }
 0x292   : > { %v3941_v61 = vmax.f32 %v1052_v54, %v1068_v57  ;;  %v3943_v62 = vmax.f32 %v1050_v55, %v1066_v58  ;;  %v3947_v1 = vmax.f32 %v1051_v63, %v1067_v0  ;;  %v1023_v19 = vadd.f32 %v3918_v31, %v981_v17  ;;  %v1041_v58 = vld [vmem:[%s3743_s1 + $0x58] sm:$0xff] }
 0x293   : > { %1094 = vmax.xlane.f32.xlu0 %v3930_v51  ;;  %1096 = vmax.xlane.f32.xlu2 %v3932_v52  ;;  %v3955_v14 = vmax.f32 %v1049_v7, %v1065_v9  ;;  %v1069_v20 = vmul.f32 0.2, %v1053_v15  ;;  %v1072_v22 = vmul.f32 0.2, %v1056_v18  ;;  %v1043_v7 = vld [vmem:[%s3743_s1 + $0x68] sm:$0xff] }
 0x294   : > { %1098 = vmax.xlane.f32.xlu1 %v3934_v53  ;;  %v1055_v23 = vadd.f32 %v1039_v21, %v1023_v19 }
 0x295   : > { %v3961_v24 = vmax.f32 %v1053_v15, %v1069_v20  ;;  %v3965_v26 = vmax.f32 %v1056_v18, %v1072_v22 }
 0x296   : > { %v1071_v28 = vmul.f32 0.2, %v1055_v23 }
 0x298   : > { %v3969_v32 = vmax.f32 %v1055_v23, %v1071_v28 }
 0x29b   : > { %1106 = vmax.xlane.f32.xlu2 %v3941_v61 }
 0x29c   : > { %1102 = vmax.xlane.f32.xlu1 %v3943_v62 }
 0x2a4   : > { %1104 = vmax.xlane.f32.xlu1 %v3947_v1  ;;  %v996_v30 = vpop.permute.xlu1 %995 }
 0x2a5   : > { %v1026_v33 = vadd.f32 %v3918_v31, %v996_v30 }
 0x2a7   : > { %990 = vperm.xlu0 %3259, %v894_v25   ;;  %v1022_v25 = vadd.f32 %v3918_v31, %v976_v6  ;;  %v1058_v36 = vadd.f32 %v1042_v35, %v1026_v33 }
 0x2a9   : > { %v1054_v29 = vadd.f32 %v1038_v27, %v1022_v25  ;;  %v1074_v38 = vmul.f32 0.2, %v1058_v36 }
 0x2ab   : > { %v1070_v34 = vmul.f32 0.2, %v1054_v29  ;;  %v3977_v39 = vmax.f32 %v1058_v36, %v1074_v38 }
 0x2ad   : > { %v3974_v37 = vmax.f32 %v1054_v29, %v1070_v34 }
 0x2b3   : > { %1005 = vperm.xlu2 %3261, %v903_v3  }
 0x2bd   : > { %1000 = vperm.xlu1 %3260, %v900_v2  }
 0x2d1   : > { %1100 = vmax.xlane.f32.xlu0 %v3955_v14 }
 0x2d9   : > { %1108 = vmax.xlane.f32.xlu0 %v3961_v24 }
 0x2dc   : > { %1114 = vmax.xlane.f32.xlu2 %v3965_v26 }
 0x2e1   : > { %1112 = vmax.xlane.f32.xlu0 %v3969_v32 }
 0x2e7   : > { %1110 = vmax.xlane.f32.xlu1 %v3974_v37 }
 0x2ef   : > { %1118 = vmax.xlane.f32.xlu1 %v3977_v39 }
 0x2f5   : > { %1010 = vperm.xlu0 %3259, %v906_v40  }
 0x306   : > { %v1095_v41 = vpop.xlane.xlu0 %1094  ;;  %v1097_v43 = vpop.xlane.xlu2 %1096 }
 0x307   : > { %v1126_v42 = vsub.f32 %v3930_v51, %v1095_v41  ;;  %v1099_v44 = vpop.xlane.xlu1 %1098  ;;  %v1127_v46 = vsub.f32 %v3932_v52, %v1097_v43  ;;  %v1045_v41 = vld [vmem:[%s3743_s1 + $0x78] sm:$0xff] }
 0x308   : > { %v1128_v47 = vsub.f32 %v3934_v53, %v1099_v44 }
 0x309   : > { %v1142_v45 = vmul.f32 1.442695, %v1126_v42  ;;  %v1144_v48 = vmul.f32 1.442695, %v1127_v46 }
 0x30a   : > { %v1146_v49 = vmul.f32 1.442695, %v1128_v47  ;;  %v3010_v47 = vld [vmem:[%s4736_s5 + $0x38] sm:$0xff] }
 0x30b   : > { %3269 = vpow2.f32 %v1142_v45  ;;  %1424 = vmatpush.msrb.mxu0 %v3010_v47  ;;  %3171 = vmatpush.msra.mxu3 %v3010_v47 }
 0x30c   : > { %3271 = vpow2.f32 %v1144_v48  ;;  %v3008_v48 = vld [vmem:[%s4736_s5 + $0x28] sm:$0xff] }
 0x30d   : > { %3273 = vpow2.f32 %v1146_v49  ;;  %v3007_v49 = vld [vmem:[%s4736_s5 + $0x20] sm:$0xff] }
 0x30e   : > { %v1107_v4 = vpop.xlane.xlu2 %1106 }
 0x30f   : > { %v1103_v50 = vpop.xlane.xlu1 %1102  ;;  %v1132_v33 = vsub.f32 %v3941_v61, %v1107_v4 }
 0x310   : > { %v1130_v53 = vsub.f32 %v3943_v62, %v1103_v50 }
 0x311   : > { %v3270_v54 = vpop.eup %3269  ;;  %v1154_v35 = vmul.f32 1.442695, %v1132_v33  ;;  %v3030_v33 = vld [vmem:[%s4738_s7 + $0x38] sm:$0xff] }
 0x312   : > { %1238 = vmatmul.f32.vlgmr.msrb.gmra.mxu3 %v3270_v54  ;;  %1174 = vadd.xlane.f32.xlu2 %v3270_v54  ;;  %v3983_v56 = vpop.eup %3271  ;;  %v1150_v2 = vmul.f32 1.442695, %v1130_v53  ;;  %v4030_v54 = vld [vmem:[%s4739_s8] ss:$0 sm:$0xff] }
 0x313   : > { %v3274_v57 = vpop.eup %3273  ;;  %1542 = vmatpush.msrb.mxu1 %v3030_v33 }
 0x316   : > { %v1006_v6 = vpop.permute.xlu2 %1005 }
 0x317   : > { %v1105_v55 = vpop.xlane.xlu1 %1104  ;;  %v1028_v9 = vadd.f32 %v3918_v31, %v1006_v6 }
 0x318   : > { %v1131_v51 = vsub.f32 %v3947_v1, %v1105_v55 }
 0x319   : > { %v991_v59 = vpop.permute.xlu0 %990  ;;  %v1060_v13 = vadd.f32 %v1044_v11, %v1028_v9 }
 0x31a   : > { %v1152_v52 = vmul.f32 1.442695, %v1131_v51  ;;  %v1025_v60 = vadd.f32 %v3918_v31, %v991_v59  ;;  %1241 = vmatmul.f32.gmra.mxu3 %v3983_v56  ;;  %1178 = vadd.xlane.f32.xlu2 %v3274_v57 }
 0x31b   : > { %v1076_v16 = vmul.f32 0.2, %v1060_v13 }
 0x31c   : > { %3275 = vpow2.f32 %v1152_v52  ;;  %v1057_v63 = vadd.f32 %v1041_v58, %v1025_v60  ;;  %v4035_v58 = vld [vmem:[%s4740_s9] ss:$0 sm:$0xff] }
 0x31d   : > { %3277 = vpow2.f32 %v1150_v2  ;;  %v4000_v17 = vmax.f32 %v1060_v13, %v1076_v16 }
 0x31e   : > { %v1073_v0 = vmul.f32 0.2, %v1057_v63 }
 0x320   : > { %v3990_v3 = vmax.f32 %v1057_v63, %v1073_v0 }
 0x322   : > { %v3276_v1 = vpop.eup %3275  ;;  %1244 = vmatmul.f32.gmra.mxu3 %v3274_v57  ;;  %1116 = vmax.xlane.f32.xlu0 %v3990_v3 }
 0x323   : > { %1184 = vadd.xlane.f32.xlu2 %v3276_v1  ;;  %v3278_v5 = vpop.eup %3277 }
 0x32a   : > { %1182 = vadd.xlane.f32.xlu0 %v3278_v5 }
 0x32f   : > { %v1001_v8 = vpop.permute.xlu1 %1000 }
 0x330   : > { %v1027_v62 = vadd.f32 %v3918_v31, %v1001_v8 }
 0x332   : > { %v1059_v10 = vadd.f32 %v1043_v7, %v1027_v62 }
 0x334   : > { %v1075_v12 = vmul.f32 0.2, %v1059_v10 }
 0x336   : > { %v3997_v15 = vmax.f32 %v1059_v10, %v1075_v12 }
 0x338   : > { %1120 = vmax.xlane.f32.xlu1 %v3997_v15 }
 0x340   : > { %1122 = vmax.xlane.f32.xlu1 %v4000_v17 }
 0x344   : > { %v1101_v18 = vpop.xlane.xlu0 %1100 }
 0x345   : > { %v1129_v19 = vsub.f32 %v3955_v14, %v1101_v18 }
 0x347   : > { %v1148_v20 = vmul.f32 1.442695, %v1129_v19 }
 0x349   : > { %3279 = vpow2.f32 %v1148_v20 }
 0x34c   : > { %v1109_v21 = vpop.xlane.xlu0 %1108 }
 0x34d   : > { %v1133_v22 = vsub.f32 %v3961_v24, %v1109_v21 }
 0x34f   : > { %v3280_v23 = vpop.eup %3279  ;;  %v1156_v25 = vmul.f32 1.442695, %v1133_v22  ;;  %v1115_v27 = vpop.xlane.xlu2 %1114 }
 0x350   : > { %1247 = vmatmul.f32.gmra.mxu3 %v3280_v23  ;;  %v1136_v28 = vsub.f32 %v3965_v26, %v1115_v27 }
 0x351   : > { %3281 = vpow2.f32 %v1156_v25 }
 0x352   : > { %v1162_v29 = vmul.f32 1.442695, %v1136_v28 }
 0x354   : > { %3283 = vpow2.f32 %v1162_v29  ;;  %v1113_v38 = vpop.xlane.xlu0 %1112 }
 0x357   : > { %v3282_v30 = vpop.eup %3281 }
 0x358   : > { %1250 = vmatmul.f32.gmra.mxu3 %v3278_v5  ;;  %1188 = vadd.xlane.f32.xlu0 %v3282_v30 }
 0x35a   : > { %v1111_v14 = vpop.xlane.xlu1 %1110  ;;  %v3284_v36 = vpop.eup %3283 }
 0x35b   : > { %v1134_v34 = vsub.f32 %v3974_v37, %v1111_v14  ;;  %v1135_v37 = vsub.f32 %v3969_v32, %v1113_v38  ;;  %v3029_v14 = vld [vmem:[%s4738_s7 + $0x30] sm:$0xff] }
 0x35c   : > { %1543 = vmatpush.msrb.mxu1 %v3029_v14 }
 0x35d   : > { %v1158_v24 = vmul.f32 1.442695, %v1134_v34  ;;  %v1160_v46 = vmul.f32 1.442695, %v1135_v37 }
 0x35f   : > { %3285 = vpow2.f32 %v1158_v24 }
 0x360   : > { %1253 = vmatmul.f32.gmra.mxu3 %v3276_v1  ;;  %1194 = vadd.xlane.f32.xlu0 %v3284_v36  ;;  %3287 = vpow2.f32 %v1154_v35  ;;  %v3028_v35 = vld [vmem:[%s4738_s7 + $0x28] sm:$0xff] }
 0x361   : > { %3289 = vpow2.f32 %v1160_v46  ;;  %1544 = vmatpush.msrb.mxu1 %v3028_v35 }
 0x362   : > { %v1119_v52 = vpop.xlane.xlu1 %1118 }
 0x363   : > { %v1138_v63 = vsub.f32 %v3977_v39, %v1119_v52 }
 0x365   : > { %v3286_v26 = vpop.eup %3285  ;;  %v1166_v1 = vmul.f32 1.442695, %v1138_v63 }
 0x366   : > { %1190 = vadd.xlane.f32.xlu2 %v3286_v26  ;;  %v3288_v40 = vpop.eup %3287 }
 0x367   : > { %v1011_v42 = vpop.permute.xlu0 %1010  ;;  %v3290_v32 = vpop.eup %3289 }
 0x368   : > { %v1029_v43 = vadd.f32 %v3918_v31, %v1011_v42  ;;  %1256 = vmatmul.f32.gmra.mxu3 %v3288_v40  ;;  %v3009_v31 = vld [vmem:[%s4736_s5 + $0x30] sm:$0xff] }
 0x369   : > { %1425 = vmatpush.msrb.mxu0 %v3009_v31  ;;  %3172 = vmatpush.msra.mxu3 %v3009_v31 }
 0x36a   : > { %v1061_v61 = vadd.f32 %v1045_v41, %v1029_v43  ;;  %v3027_v41 = vld [vmem:[%s4738_s7 + $0x20] sm:$0xff] }
 0x36b   : > { %1426 = vmatpush.msrb.mxu0 %v3008_v48  ;;  %3173 = vmatpush.msra.mxu3 %v3008_v48 }
 0x36c   : > { %v1077_v44 = vmul.f32 0.2, %v1061_v61  ;;  %1545 = vmatpush.msrb.mxu1 %v3027_v41 }
 0x36d   : > { %1427 = vmatpush.msrb.mxu0 %v3007_v49  ;;  %3174 = vmatpush.msra.mxu3 %v3007_v49 }
 0x36e   : > { %v4010_v45 = vmax.f32 %v1061_v61, %v1077_v44 }
 0x370   : > { %1259 = vmatmul.f32.gmra.mxu3 %v3282_v30  ;;  %1124 = vmax.xlane.f32.xlu1 %v4010_v45 }
 0x378   : > { %1262 = vmatmul.f32.gmra.mxu3 %v3286_v26  ;;  %1176 = vadd.xlane.f32.xlu1 %v3983_v56 }
 0x380   : > { %1265 = vmatmul.f32.gmra.mxu3 %v3290_v32  ;;  %1180 = vadd.xlane.f32.xlu1 %v3280_v23 }
 0x385   : > { %v1175_v50 = vpop.xlane.xlu2 %1174 }
 0x386   : > { %3291 = vrcp.f32 %v1175_v50 }
 0x388   : > { %1268 = vmatmul.f32.gmra.mxu3 %v3284_v36  ;;  %1186 = vadd.xlane.f32.xlu1 %v3288_v40 }
 0x38c   : > { %v3292_v55 = vpop.eup %3291 }
 0x38d   : > { %v1179_v20 = vpop.xlane.xlu2 %1178 }
 0x390   : > { %1192 = vadd.xlane.f32.xlu1 %v3290_v32 }
 0x395   : > { %v1239_v56 = vpop.f32.mrf.mxu3  ;;  %v1117_v51 = vpop.xlane.xlu0 %1116 }
 0x396   : > { %v1287_v57 = vmul.f32 %v3292_v55, %v1239_v56  ;;  %v1137_v59 = vsub.f32 %v3990_v3, %v1117_v51  ;;  %v1185_v37 = vpop.xlane.xlu2 %1184 }
 0x398   : > { %v1307_v60 = vmul.f32 %v4030_v54, %v1287_v57  ;;  %v1164_v53 = vmul.f32 1.442695, %v1137_v59 }
 0x39a   : > { %v1327_v0 = vadd.f32 %v4035_v58, %v1307_v60  ;;  %3293 = vpow2.f32 %v1164_v53 }
 0x39b   : > { %3295 = vpow2.f32 %v1166_v1 }
 0x39c   : > { %v1343_v2 = vmax.f32 %v1327_v0, 0.0 }
 0x39d   : > { %v1242_v11 = vpop.f32.mrf.mxu3  ;;  %v1183_v40 = vpop.xlane.xlu0 %1182 }
 0x39e   : > { %3011 = vmatmul.msk.f32.vlgmr.msrb.gmra.mxu0 %vm678_vm1, %v1343_v2 }
 0x3a0   : > { %v3294_v4 = vpop.eup %3293 }
 0x3a1   : > { %1196 = vadd.xlane.f32.xlu1 %v3294_v4  ;;  %1271 = vmatmul.f32.gmra.mxu3 %v3294_v4  ;;  %v3296_v5 = vpop.eup %3295 }
 0x3a5   : > { %v1245_v12 = vpop.f32.mrf.mxu3 }
 0x3a9   : > { %1274 = vmatmul.f32.gmra.mxu3 %v3296_v5 }
 0x3ab   : > { %v1121_v3 = vpop.xlane.xlu1 %1120 }
 0x3ac   : > { %v1139_v6 = vsub.f32 %v3997_v15, %v1121_v3 }
 0x3ae   : > { %v1168_v7 = vmul.f32 1.442695, %v1139_v6 }
 0x3b0   : > { %3297 = vpow2.f32 %v1168_v7 }
 0x3b3   : > { %v1123_v8 = vpop.xlane.xlu1 %1122 }
 0x3b4   : > { %v1140_v39 = vsub.f32 %v4000_v17, %v1123_v8 }
 0x3b6   : > { %v3298_v62 = vpop.eup %3297  ;;  %v1170_v9 = vmul.f32 1.442695, %v1140_v39 }
 0x3b7   : > { %1200 = vadd.xlane.f32.xlu1 %v3298_v62  ;;  %1277 = vmatmul.f32.gmra.mxu3 %v3298_v62 }
 0x3b8   : > { %3299 = vpow2.f32 %v1170_v9 }
 0x3be   : > { %v3300_v10 = vpop.eup %3299 }
 0x3bf   : > { %1202 = vadd.xlane.f32.xlu2 %v3300_v10  ;;  %1280 = vmatmul.f32.gmra.mxu3 %v3300_v10 }
 0x3c7   : > { %1198 = vadd.xlane.f32.xlu2 %v3296_v5 }
 0x3cb   : > { %v1189_v60 = vpop.xlane.xlu0 %1188 }
 0x3d3   : > { %v1248_v13 = vpop.f32.mrf.mxu3 }
 0x3d9   : > { %v1191_v4 = vpop.xlane.xlu2 %1190 }
 0x3db   : > { %v1251_v18 = vpop.f32.mrf.mxu3 }
 0x3e3   : > { %v1125_v16 = vpop.xlane.xlu1 %1124  ;;  %v1254_v22 = vpop.f32.mrf.mxu3 }
 0x3e4   : > { %v1141_v15 = vsub.f32 %v4010_v45, %v1125_v16 }
 0x3e6   : > { %v1172_v19 = vmul.f32 1.442695, %v1141_v15 }
 0x3e8   : > { %3301 = vpow2.f32 %v1172_v19  ;;  %v1195_v19 = vpop.xlane.xlu0 %1194 }
 0x3eb   : > { %v1177_v17 = vpop.xlane.xlu1 %1176  ;;  %v1257_v24 = vpop.f32.mrf.mxu3 }
 0x3ec   : > { %3303 = vrcp.f32 %v1177_v17 }
 0x3ed   : > { %3305 = vrcp.f32 %v1179_v20 }
 0x3ee   : > { %v3302_v21 = vpop.eup %3301 }
 0x3ef   : > { %1204 = vadd.xlane.f32.xlu0 %v3302_v21  ;;  %1283 = vmatmul.f32.gmra.mxu3 %v3302_v21 }
 0x3f2   : > { %v3304_v23 = vpop.eup %3303 }
 0x3f3   : > { %v1288_v25 = vmul.f32 %v3304_v23, %v1242_v11  ;;  %v1181_v27 = vpop.xlane.xlu1 %1180  ;;  %v3306_v28 = vpop.eup %3305 }
 0x3f4   : > { %3307 = vrcp.f32 %v1181_v27  ;;  %v1289_v29 = vmul.f32 %v3306_v28, %v1245_v12  ;;  %v1260_v45 = vpop.f32.mrf.mxu3 }
 0x3f5   : > { %v1308_v30 = vmul.f32 %v4030_v54, %v1288_v25  ;;  %3309 = vrcp.f32 %v1183_v40 }
 0x3f6   : > { %v1309_v36 = vmul.f32 %v4030_v54, %v1289_v29  ;;  %3311 = vrcp.f32 %v1185_v37 }
 0x3f7   : > { %v1328_v34 = vadd.f32 %v4035_v58, %v1308_v30 }
 0x3f8   : > { %v1329_v43 = vadd.f32 %v4035_v58, %v1309_v36 }
 0x3f9   : > { %v1344_v38 = vmax.f32 %v1328_v34, 0.0 }
 0x3fa   : > { %v3308_v26 = vpop.eup %3307  ;;  %v1345_v61 = vmax.f32 %v1329_v43, 0.0 }
 0x3fb   : > { %3012 = vmatmul.msk.f32.gmra.mxu0 %vm678_vm1, %v1344_v38  ;;  %v1290_v42 = vmul.f32 %v3308_v26, %v1248_v13  ;;  %v3310_v46 = vpop.eup %3309  ;;  %v1187_v32 = vpop.xlane.xlu1 %1186 }
 0x3fc   : > { %v1291_v47 = vmul.f32 %v3310_v46, %v1251_v18  ;;  %v3312_v50 = vpop.eup %3311  ;;  %v1263_v55 = vpop.f32.mrf.mxu3  ;;  %3313 = vrcp.f32 %v1187_v32 }
 0x3fd   : > { %v1310_v44 = vmul.f32 %v4030_v54, %v1290_v42  ;;  %v1292_v56 = vmul.f32 %v3312_v50, %v1254_v22  ;;  %3315 = vrcp.f32 %v1189_v60 }
 0x3fe   : > { %v1311_v48 = vmul.f32 %v4030_v54, %v1291_v47  ;;  %3317 = vrcp.f32 %v1191_v4 }
 0x3ff   : > { %v1330_v31 = vadd.f32 %v4035_v58, %v1310_v44  ;;  %v1312_v57 = vmul.f32 %v4030_v54, %v1292_v56 }
 0x400   : > { %v1331_v51 = vadd.f32 %v4035_v58, %v1311_v48 }
 0x401   : > { %v1346_v49 = vmax.f32 %v1330_v31, 0.0  ;;  %v1332_v63 = vadd.f32 %v4035_v58, %v1312_v57 }
 0x402   : > { %v1347_v59 = vmax.f32 %v1331_v51, 0.0  ;;  %v3314_v52 = vpop.eup %3313 }
 0x403   : > { %3013 = vmatmul.msk.f32.gmra.mxu0 %vm678_vm1, %v1345_v61  ;;  %v1293_v53 = vmul.f32 %v3314_v52, %v1257_v24  ;;  %v1348_v2 = vmax.f32 %v1332_v63, 0.0  ;;  %v3316_v3 = vpop.eup %3315  ;;  %v1193_v62 = vpop.xlane.xlu1 %1192 }
 0x404   : > { %v1266_v0 = vpop.f32.mrf.mxu3  ;;  %v1294_v6 = vmul.f32 %v3316_v3, %v1260_v45  ;;  %v3318_v10 = vpop.eup %3317  ;;  %3319 = vrcp.f32 %v1193_v62 }
 0x405   : > { %v1313_v1 = vmul.f32 %v4030_v54, %v1293_v53  ;;  %v1295_v11 = vmul.f32 %v3318_v10, %v1263_v55  ;;  %3321 = vrcp.f32 %v1195_v19 }
 0x406   : > { %v1314_v39 = vmul.f32 %v4030_v54, %v1294_v6 }
 0x407   : > { %v1333_v7 = vadd.f32 %v4035_v58, %v1313_v1  ;;  %v1315_v16 = vmul.f32 %v4030_v54, %v1295_v11 }
 0x408   : > { %v1334_v12 = vadd.f32 %v4035_v58, %v1314_v39 }
 0x409   : > { %v1349_v9 = vmax.f32 %v1333_v7, 0.0  ;;  %v1335_v20 = vadd.f32 %v4035_v58, %v1315_v16 }
 0x40a   : > { %v1350_v18 = vmax.f32 %v1334_v12, 0.0  ;;  %v3320_v15 = vpop.eup %3319 }
 0x40b   : > { %3014 = vmatmul.msk.f32.gmra.mxu0 %vm678_vm1, %v1346_v49  ;;  %v1296_v17 = vmul.f32 %v3320_v15, %v1266_v0  ;;  %v1351_v21 = vmax.f32 %v1335_v20, 0.0  ;;  %v3322_v28 = vpop.eup %3321 }
 0x40c   : > { %v1269_v8 = vpop.f32.mrf.mxu3 }
 0x40d   : > { %v1316_v22 = vmul.f32 %v4030_v54, %v1296_v17  ;;  %v1297_v29 = vmul.f32 %v3322_v28, %v1269_v8  ;;  %v3047_v28 = vld [vmem:[%s4737_s6 + $0x1] sm:$0x1] }
 0x40f   : > { %v1336_v30 = vadd.f32 %v4035_v58, %v1316_v22  ;;  %v1317_v33 = vmul.f32 %v4030_v54, %v1297_v29 }
 0x411   : > { %v1352_v14 = vmax.f32 %v1336_v30, 0.0  ;;  %v1337_v36 = vadd.f32 %v4035_v58, %v1317_v33 }
 0x413   : > { %3015 = vmatmul.msk.f32.gmra.mxu0 %vm678_vm1, %v1347_v59  ;;  %v1353_v40 = vmax.f32 %v1337_v36, 0.0  ;;  %v3066_v36 = vld [vmem:[%s3743_s1 + $0x88] sm:$0xff] }
 0x414   : > { %v1197_v27 = vpop.xlane.xlu1 %1196 }
 0x415   : > { %3323 = vrcp.f32 %v1197_v27 }
 0x41b   : > { %v4072_v5 = vpop.f32.mrf.mxu0  ;;  %3016 = vmatmul.msk.f32.gmra.mxu0 %vm678_vm1, %v1348_v2  ;;  %v3324_v24 = vpop.eup %3323 }
 0x41c   : > { %3031 = vmatmul.msk.f32.vlgmr.msrb.gmra.mxu1 %vm678_vm1, %v4072_v5 }
 0x423   : > { %3017 = vmatmul.msk.f32.gmra.mxu0 %vm678_vm1, %v1349_v9 }
 0x424   : > { %v1272_v13 = vpop.f32.mrf.mxu3 }
 0x425   : > { %v1298_v38 = vmul.f32 %v3324_v24, %v1272_v13  ;;  %v3067_v24 = vld [vmem:[%s3743_s1 + $0x90] sm:$0xff] }
 0x427   : > { %v1318_v41 = vmul.f32 %v4030_v54, %v1298_v38  ;;  %v3065_v38 = vld [vmem:[%s3743_s1 + $0x80] sm:$0xff] }
 0x429   : > { %v1338_v45 = vadd.f32 %v4035_v58, %v1318_v41 }
 0x42a   : > { %v1201_v61 = vpop.xlane.xlu1 %1200 }
 0x42b   : > { %3018 = vmatmul.msk.f32.gmra.mxu0 %vm678_vm1, %v1350_v18  ;;  %v1354_v31 = vmax.f32 %v1338_v45, 0.0  ;;  %v3068_v45 = vld [vmem:[%s3743_s1 + $0x98] sm:$0xff] }
 0x42c   : > { %v1275_v23 = vpop.f32.mrf.mxu3 }
 0x432   : > { %v1203_v25 = vpop.xlane.xlu2 %1202 }
 0x433   : > { %3019 = vmatmul.msk.f32.gmra.mxu0 %vm678_vm1, %v1351_v21  ;;  %3325 = vrcp.f32 %v1203_v25 }
 0x439   : > { %v3326_v26 = vpop.eup %3325 }
 0x43a   : > { %v1199_v34 = vpop.xlane.xlu2 %1198  ;;  %v1278_v35 = vpop.f32.mrf.mxu3 }
 0x43b   : > { %3020 = vmatmul.msk.f32.gmra.mxu0 %vm678_vm1, %v1352_v14  ;;  %3327 = vrcp.f32 %v1199_v34 }
 0x43c   : > { %3329 = vrcp.f32 %v1201_v61 }
 0x441   : > { %v3328_v42 = vpop.eup %3327 }
 0x442   : > { %v1281_v43 = vpop.f32.mrf.mxu3  ;;  %v1299_v37 = vmul.f32 %v3328_v42, %v1275_v23  ;;  %v3330_v49 = vpop.eup %3329 }
 0x443   : > { %v1301_v44 = vmul.f32 %v3326_v26, %v1281_v43  ;;  %3021 = vmatmul.msk.f32.gmra.mxu0 %vm678_vm1, %v1353_v40  ;;  %v1300_v50 = vmul.f32 %v3330_v49, %v1278_v35 }
 0x444   : > { %v1319_v48 = vmul.f32 %v4030_v54, %v1299_v37 }
 0x445   : > { %v1321_v46 = vmul.f32 %v4030_v54, %v1301_v44  ;;  %v1320_v56 = vmul.f32 %v4030_v54, %v1300_v50 }
 0x446   : > { %v1339_v55 = vadd.f32 %v4035_v58, %v1319_v48 }
 0x447   : > { %v1341_v47 = vadd.f32 %v4035_v58, %v1321_v46  ;;  %v1340_v57 = vadd.f32 %v4035_v58, %v1320_v56 }
 0x448   : > { %v1355_v51 = vmax.f32 %v1339_v55, 0.0 }
 0x449   : > { %v1357_v32 = vmax.f32 %v1341_v47, 0.0  ;;  %v1356_v59 = vmax.f32 %v1340_v57, 0.0 }
 0x44b   : > { %3025 = vmatmul.msk.f32.vlgmr.msra.gmra.mxu3 %vm678_vm1, %v1357_v32  ;;  %3022 = vmatmul.msk.f32.gmra.mxu0 %vm678_vm1, %v1354_v31 }
 0x453   : > { %3023 = vmatmul.msk.f32.gmra.mxu0 %vm678_vm1, %v1355_v51 }
 0x45b   : > { %3024 = vmatmul.msk.f32.gmra.mxu0 %vm678_vm1, %v1356_v59 }
 0x462   : > { %v1205_v52 = vpop.xlane.xlu0 %1204 }
 0x463   : > { %3331 = vrcp.f32 %v1205_v52 }
 0x469   : > { %v3332_v60 = vpop.eup %3331 }
 0x472   : > { %v1284_v53 = vpop.f32.mrf.mxu3 }
 0x473   : > { %v1302_v63 = vmul.f32 %v3332_v60, %v1284_v53  ;;  %v3069_v53 = vld [vmem:[%s3743_s1 + $0xa0] sm:$0xff] }
 0x475   : > { %v1322_v0 = vmul.f32 %v4030_v54, %v1302_v63 }
 0x477   : > { %v1342_v2 = vadd.f32 %v4035_v58, %v1322_v0 }
 0x478   : > { %v4105_v1 = vpop.f32.mrf.mxu0 }
 0x479   : > { %3032 = vmatmul.msk.f32.gmra.mxu1 %vm678_vm1, %v4105_v1  ;;  %v1358_v4 = vmax.f32 %v1342_v2, 0.0 }
 0x47b   : > { %3026 = vmatmul.msk.f32.gmra.mxu3 %vm678_vm1, %v1358_v4  ;;  %v3072_v4 = vld [vmem:[%s3743_s1 + $0xb8] sm:$0xff] }
 0x480   : > { %v4110_v3 = vpop.f32.mrf.mxu0 }
 0x481   : > { %3033 = vmatmul.msk.f32.gmra.mxu1 %vm678_vm1, %v4110_v3 }
 0x488   : > { %v4114_v6 = vpop.f32.mrf.mxu0 }
 0x489   : > { %3034 = vmatmul.msk.f32.gmra.mxu1 %vm678_vm1, %v4114_v6 }
 0x490   : > { %v4118_v54 = vpop.f32.mrf.mxu0 }
 0x491   : > { %3035 = vmatmul.msk.f32.gmra.mxu1 %vm678_vm1, %v4118_v54 }
 0x498   : > { %v4122_v58 = vpop.f32.mrf.mxu0 }
 0x499   : > { %v1547_v7 = vpop.f32.mrf.mxu1  ;;  %3036 = vmatmul.msk.f32.gmra.mxu1 %vm678_vm1, %v4122_v58 }
 0x49a   : > { %1622 = vperm.xlu0 %3259, %v1547_v7  }
 0x4a0   : > { %v4126_v8 = vpop.f32.mrf.mxu0 }
 0x4a1   : > { %3037 = vmatmul.msk.f32.gmra.mxu1 %vm678_vm1, %v4126_v8 }
 0x4a8   : > { %v4130_v39 = vpop.f32.mrf.mxu0 }
 0x4a9   : > { %3038 = vmatmul.msk.f32.gmra.mxu1 %vm678_vm1, %v4130_v39 }
 0x4b0   : > { %v1453_v62 = vpop.f32.mrf.mxu0 }
 0x4b1   : > { %3039 = vmatmul.msk.f32.gmra.mxu1 %vm678_vm1, %v1453_v62 }
 0x4b8   : > { %v1456_v9 = vpop.f32.mrf.mxu0 }
 0x4b9   : > { %3040 = vmatmul.msk.f32.gmra.mxu1 %vm678_vm1, %v1456_v9 }
 0x4c0   : > { %v1459_v10 = vpop.f32.mrf.mxu0 }
 0x4c1   : > { %3041 = vmatmul.msk.f32.gmra.mxu1 %vm678_vm1, %v1459_v10 }
 0x4c8   : > { %v1462_v11 = vpop.f32.mrf.mxu0 }
 0x4c9   : > { %3042 = vmatmul.msk.f32.gmra.mxu1 %vm678_vm1, %v1462_v11 }
 0x4ce   : > { %v1471_v16 = vpop.f32.mrf.mxu3 }
 0x4d0   : > { %v1465_v12 = vpop.f32.mrf.mxu0 }
 0x4d1   : > { %3043 = vmatmul.msk.f32.gmra.mxu1 %vm678_vm1, %v1465_v12 }
 0x4d8   : > { %v1468_v13 = vpop.f32.mrf.mxu0 }
 0x4d9   : > { %3044 = vmatmul.msk.f32.gmra.mxu1 %vm678_vm1, %v1468_v13 }
 0x4e1   : > { %3045 = vmatmul.msk.f32.gmra.mxu1 %vm678_vm1, %v1471_v16 }
 0x4f6   : > { %v1550_v18 = vpop.f32.mrf.mxu1 }
 0x4f7   : > { %1627 = vperm.xlu2 %3261, %v1550_v18  }
 0x4fe   : > { %v1474_v15 = vpop.f32.mrf.mxu3  ;;  %v1553_v19 = vpop.f32.mrf.mxu1 }
 0x4ff   : > { %1632 = vperm.xlu1 %3260, %v1553_v19   ;;  %3046 = vmatmul.msk.f32.gmra.mxu1 %vm678_vm1, %v1474_v15 }
 0x500   : > { %3048 = vmatpush.xpose.msk.msra.mxu2 %vm678_vm1, %v1474_v15 }
 0x504   : > { %3049 = vmatpush.xpose.msk.msra.mxu2 %vm678_vm1, %v1471_v16 }
 0x506   : > { %v1556_v20 = vpop.f32.mrf.mxu1 }
 0x507   : > { %1637 = vperm.xlu0 %3259, %v1556_v20  }
 0x508   : > { %3050 = vmatpush.xpose.msk.msra.mxu2 %vm678_vm1, %v1468_v13 }
 0x50c   : > { %3051 = vmatpush.xpose.msk.msra.mxu2 %vm678_vm1, %v1465_v12  ;;  %v1623_v30 = vpop.permute.xlu0 %1622 }
 0x50e   : > { %v1559_v17 = vpop.f32.mrf.mxu1 }
 0x50f   : > { %1642 = vperm.xlu0 %3259, %v1559_v17  }
 0x510   : > { %3052 = vmatpush.xpose.msk.msra.mxu2 %vm678_vm1, %v1462_v11 }
 0x514   : > { %3053 = vmatpush.xpose.msk.msra.mxu2 %vm678_vm1, %v1459_v10 }
 0x516   : > { %v1562_v21 = vpop.f32.mrf.mxu1 }
 0x517   : > { %1647 = vperm.xlu2 %3261, %v1562_v21  }
 0x518   : > { %3054 = vmatpush.xpose.msk.msra.mxu2 %vm678_vm1, %v1456_v9 }
 0x51c   : > { %3055 = vmatpush.xpose.msk.msra.mxu2 %vm678_vm1, %v1453_v62 }
 0x51e   : > { %v1565_v22 = vpop.f32.mrf.mxu1 }
 0x51f   : > { %1652 = vperm.xlu0 %3259, %v1565_v22   ;;  %v3075_v22 = vld [vmem:[%s3743_s1 + $0xd0] sm:$0xff] }
 0x520   : > { %3056 = vmatpush.xpose.msk.msra.mxu2 %vm678_vm1, %v4130_v39 }
 0x524   : > { %3057 = vmatpush.xpose.msk.msra.mxu2 %vm678_vm1, %v4126_v8 }
 0x526   : > { %v1568_v23 = vpop.f32.mrf.mxu1 }
 0x527   : > { %1657 = vperm.xlu0 %3259, %v1568_v23  }
 0x528   : > { %3058 = vmatpush.xpose.msk.msra.mxu2 %vm678_vm1, %v4122_v58 }
 0x52c   : > { %3059 = vmatpush.xpose.msk.msra.mxu2 %vm678_vm1, %v4118_v54 }
 0x52e   : > { %v1571_v25 = vpop.f32.mrf.mxu1 }
 0x52f   : > { %1662 = vperm.xlu1 %3260, %v1571_v25  }
 0x530   : > { %3060 = vmatpush.xpose.msk.msra.mxu2 %vm678_vm1, %v4114_v6 }
 0x534   : > { %3061 = vmatpush.xpose.msk.msra.mxu2 %vm678_vm1, %v4110_v3 }
 0x536   : > { %v1574_v27 = vpop.f32.mrf.mxu1 }
 0x537   : > { %1667 = vperm.xlu2 %3261, %v1574_v27  }
 0x538   : > { %3062 = vmatpush.xpose.msk.msra.mxu2 %vm678_vm1, %v4105_v1 }
 0x53c   : > { %3063 = vmatpush.xpose.msk.msra.mxu2 %vm678_vm1, %v4072_v5 }
 0x53e   : > { %v1577_v29 = vpop.f32.mrf.mxu1 }
 0x53f   : > { %3064 = vmatmul.msk.f32.vlgmr.msra.gmra.mxu2 %vm678_vm1, %v3047_v28  ;;  %1672 = vperm.xlu1 %3260, %v1577_v29  }
 0x540   : > { %1910 = vmatpush.msrb.mxu2 %v1474_v15 }
 0x542   : > { %1911 = vmatpush.msrb.mxu2 %v1471_v16  ;;  %v3071_v16 = vld [vmem:[%s3743_s1 + $0xb0] sm:$0xff] }
 0x544   : > { %1912 = vmatpush.msrb.mxu2 %v1468_v13 }
 0x546   : > { %1913 = vmatpush.msrb.mxu2 %v1465_v12  ;;  %v1580_v50 = vpop.f32.mrf.mxu1 }
 0x548   : > { %1914 = vmatpush.msrb.mxu2 %v1462_v11 }
 0x54a   : > { %1915 = vmatpush.msrb.mxu2 %v1459_v10 }
 0x54c   : > { %1916 = vmatpush.msrb.mxu2 %v1456_v9  ;;  %v3073_v9 = vld [vmem:[%s3743_s1 + $0xc0] sm:$0xff] }
 0x54e   : > { %1917 = vmatpush.msrb.mxu2 %v1453_v62  ;;  %v1583_v51 = vpop.f32.mrf.mxu1 }
 0x550   : > { %1918 = vmatpush.msrb.mxu2 %v4130_v39 }
 0x551   : > { %v1628_v34 = vpop.permute.xlu2 %1627 }
 0x552   : > { %1919 = vmatpush.msrb.mxu2 %v4126_v8 }
 0x554   : > { %1920 = vmatpush.msrb.mxu2 %v4122_v58 }
 0x556   : > { %1921 = vmatpush.msrb.mxu2 %v4118_v54  ;;  %v1586_v57 = vpop.f32.mrf.mxu1  ;;  %v3070_v54 = vld [vmem:[%s3743_s1 + $0xa8] sm:$0xff] }
 0x558   : > { %1922 = vmatpush.msrb.mxu2 %v4114_v6 }
 0x55a   : > { %1923 = vmatpush.msrb.mxu2 %v4110_v3 }
 0x55c   : > { %1924 = vmatpush.msrb.mxu2 %v4105_v1 }
 0x55e   : > { %1925 = vmatpush.msrb.mxu2 %v4072_v5 }
 0x571   : > { %v1633_v35 = vpop.permute.xlu1 %1632  ;;  %v1648_v1 = vpop.permute.xlu2 %1647 }
 0x579   : > { %v1638_v42 = vpop.permute.xlu0 %1637 }
 0x581   : > { %v1643_v59 = vpop.permute.xlu0 %1642 }
 0x591   : > { %v1653_v52 = vpop.permute.xlu0 %1652 }
 0x599   : > { %v1658_v0 = vpop.permute.xlu0 %1657 }
 0x5a1   : > { %v1663_v58 = vpop.permute.xlu1 %1662 }
 0x5b1   : > { %v1673_v18 = vpop.permute.xlu1 %1672 }
 0x5c2   : > { %v1617_v33 = vpop.f32.mrf.mxu2 }
 0x5c3   : > { %v4178_v14 = vperm.slane %v1617_v33, 0  ;;  %v1589_v33 = vpop.f32.mrf.mxu1 }
 0x5c5   : > { %v1703_v26 = vadd.f32 %v4178_v14, %v1633_v35  ;;  %v1702_v40 = vadd.f32 %v4178_v14, %v1628_v34  ;;  %v1701_v41 = vadd.f32 %v4178_v14, %v1623_v30  ;;  %v1704_v44 = vadd.f32 %v4178_v14, %v1638_v42  ;;  %v1668_v35 = vpop.permute.xlu2 %1667 }
 0x5c6   : > { %v1705_v60 = vadd.f32 %v4178_v14, %v1643_v59  ;;  %v1708_v2 = vadd.f32 %v4178_v14, %v1658_v0  ;;  %v1706_v6 = vadd.f32 %v4178_v14, %v1648_v1  ;;  %v1709_v8 = vadd.f32 %v4178_v14, %v1663_v58 }
 0x5c7   : > { %v1736_v43 = vadd.f32 %v3067_v24, %v1703_v26  ;;  %v1735_v61 = vadd.f32 %v3066_v36, %v1702_v40  ;;  %v1734_v5 = vadd.f32 %v3065_v38, %v1701_v41  ;;  %v1737_v49 = vadd.f32 %v3068_v45, %v1704_v44 }
 0x5c8   : > { %v1738_v63 = vadd.f32 %v3069_v53, %v1705_v60  ;;  %v1741_v7 = vadd.f32 %v3072_v4, %v1708_v2  ;;  %v1739_v62 = vadd.f32 %v3070_v54, %v1706_v6  ;;  %v1742_v11 = vadd.f32 %v3073_v9, %v1709_v8 }
 0x5c9   : > { %v1752_v37 = vmul.f32 0.2, %v1736_v43  ;;  %v1751_v46 = vmul.f32 0.2, %v1735_v61  ;;  %v1750_v47 = vmul.f32 0.2, %v1734_v5  ;;  %v1707_v13 = vadd.f32 %v4178_v14, %v1653_v52 }
 0x5ca   : > { %v1753_v55 = vmul.f32 0.2, %v1737_v49  ;;  %v1754_v3 = vmul.f32 0.2, %v1738_v63  ;;  %v1757_v10 = vmul.f32 0.2, %v1741_v7  ;;  %v1711_v20 = vadd.f32 %v4178_v14, %v1673_v18 }
 0x5cb   : > { %v4188_v31 = vmax.f32 %v1736_v43, %v1752_v37  ;;  %v4190_v48 = vmax.f32 %v1735_v61, %v1751_v46  ;;  %v4192_v32 = vmax.f32 %v1734_v5, %v1750_v47  ;;  %v1755_v12 = vmul.f32 0.2, %v1739_v62  ;;  %v1592_v34 = vpop.f32.mrf.mxu1  ;;  %v3074_v5 = vld [vmem:[%s3743_s1 + $0xc8] sm:$0xff]  ;;  %v3076_v52 = vld [vmem:[%s3743_s1 + $0xd8] sm:$0xff] }
 0x5cc   : > { %v4197_v56 = vmax.f32 %v1737_v49, %v1753_v55  ;;  %v4207_v39 = vmax.f32 %v1738_v63, %v1754_v3  ;;  %v4213_v15 = vmax.f32 %v1741_v7, %v1757_v10  ;;  %v1758_v19 = vmul.f32 0.2, %v1742_v11  ;;  %v3078_v47 = vld [vmem:[%s3743_s1 + $0xe8] sm:$0xff] }
 0x5cd   : > { %1786 = vmax.xlane.f32.xlu0 %v4188_v31  ;;  %1784 = vmax.xlane.f32.xlu2 %v4190_v48  ;;  %v4217_v17 = vmax.f32 %v1739_v62, %v1755_v12  ;;  %v1740_v21 = vadd.f32 %v3071_v16, %v1707_v13  ;;  %v1744_v25 = vadd.f32 %v3075_v22, %v1711_v20 }
 0x5ce   : > { %1782 = vmax.xlane.f32.xlu1 %v4192_v32  ;;  %v4221_v23 = vmax.f32 %v1742_v11, %v1758_v19  ;;  %v1710_v43 = vadd.f32 %v4178_v14, %v1668_v35 }
 0x5cf   : > { %v1756_v27 = vmul.f32 0.2, %v1740_v21  ;;  %v1760_v28 = vmul.f32 0.2, %v1744_v25 }
 0x5d0   : > { %v1743_v37 = vadd.f32 %v3074_v5, %v1710_v43 }
 0x5d1   : > { %v4224_v29 = vmax.f32 %v1740_v21, %v1756_v27  ;;  %v4227_v30 = vmax.f32 %v1744_v25, %v1760_v28 }
 0x5d5   : > { %1788 = vmax.xlane.f32.xlu2 %v4197_v56 }
 0x5e1   : > { %1687 = vperm.xlu0 %3259, %v1586_v57  }
 0x5e7   : > { %1677 = vperm.xlu1 %3260, %v1580_v50  }
 0x5ed   : > { %1682 = vperm.xlu2 %3261, %v1583_v51  }
 0x60b   : > { %1790 = vmax.xlane.f32.xlu0 %v4207_v39 }
 0x611   : > { %1796 = vmax.xlane.f32.xlu1 %v4213_v15 }
 0x613   : > { %1792 = vmax.xlane.f32.xlu0 %v4217_v17 }
 0x616   : > { %1798 = vmax.xlane.f32.xlu2 %v4221_v23 }
 0x61b   : > { %1794 = vmax.xlane.f32.xlu0 %v4224_v29 }
 0x61e   : > { %1802 = vmax.xlane.f32.xlu2 %v4227_v30 }
 0x62a   : > { %1697 = vperm.xlu1 %3260, %v1592_v34  }
 0x62f   : > { %1692 = vperm.xlu0 %3259, %v1589_v33   ;;  %v3080_v33 = vld [vmem:[%s3743_s1 + $0xf8] sm:$0xff] }
 0x640   : > { %v1785_v38 = vpop.xlane.xlu2 %1784  ;;  %v1787_v42 = vpop.xlane.xlu0 %1786 }
 0x641   : > { %v1783_v24 = vpop.xlane.xlu1 %1782  ;;  %v1815_v40 = vsub.f32 %v4190_v48, %v1785_v38  ;;  %v1816_v44 = vsub.f32 %v4188_v31, %v1787_v42  ;;  %v1759_v48 = vmul.f32 0.2, %v1743_v37  ;;  %v3079_v38 = vld [vmem:[%s3743_s1 + $0xf0] sm:$0xff] }
 0x642   : > { %v1814_v36 = vsub.f32 %v4192_v32, %v1783_v24 }
 0x643   : > { %v1832_v41 = vmul.f32 1.442695, %v1815_v40  ;;  %v1834_v46 = vmul.f32 1.442695, %v1816_v44  ;;  %v4244_v57 = vmax.f32 %v1743_v37, %v1759_v48 }
 0x644   : > { %v1830_v26 = vmul.f32 1.442695, %v1814_v36 }
 0x646   : > { %3333 = vpow2.f32 %v1830_v26 }
 0x647   : > { %3335 = vpow2.f32 %v1832_v41 }
 0x648   : > { %v1789_v45 = vpop.xlane.xlu2 %1788  ;;  %3337 = vpow2.f32 %v1834_v46 }
 0x649   : > { %v1817_v55 = vsub.f32 %v4197_v56, %v1789_v45  ;;  %v3077_v56 = vld [vmem:[%s3743_s1 + $0xe0] sm:$0xff] }
 0x64b   : > { %v1836_v53 = vmul.f32 1.442695, %v1817_v55 }
 0x64c   : > { %v4233_v61 = vpop.eup %3333 }
 0x64d   : > { %1926 = vmatmul.f32.vlgmr.msrb.gmra.mxu2 %v4233_v61  ;;  %v4239_v49 = vpop.eup %3335  ;;  %3339 = vpow2.f32 %v1836_v53 }
 0x64e   : > { %v3338_v2 = vpop.eup %3337 }
 0x650   : > { %v1683_v59 = vpop.permute.xlu2 %1682 }
 0x651   : > { %v1713_v1 = vadd.f32 %v4178_v14, %v1683_v59 }
 0x653   : > { %v1688_v32 = vpop.permute.xlu0 %1687  ;;  %v1746_v6 = vadd.f32 %v3077_v56, %v1713_v1  ;;  %v3340_v58 = vpop.eup %3339 }
 0x654   : > { %v1714_v50 = vadd.f32 %v4178_v14, %v1688_v32 }
 0x655   : > { %1929 = vmatmul.f32.gmra.mxu2 %v4239_v49  ;;  %v1762_v7 = vmul.f32 0.2, %v1746_v6 }
 0x656   : > { %v1747_v51 = vadd.f32 %v3078_v47, %v1714_v50 }
 0x657   : > { %v4257_v8 = vmax.f32 %v1746_v6, %v1762_v7  ;;  %v3083_v6 = vld [vmem:[%s4736_s5 + $0x40] sm:$0xff] }
 0x658   : > { %v1763_v31 = vmul.f32 0.2, %v1747_v51 }
 0x659   : > { %v1678_v60 = vpop.permute.xlu1 %1677  ;;  %1800 = vmax.xlane.f32.xlu0 %v4244_v57 }
 0x65a   : > { %v1712_v63 = vadd.f32 %v4178_v14, %v1678_v60  ;;  %v4249_v0 = vmax.f32 %v1747_v51, %v1763_v31 }
 0x65c   : > { %v1745_v4 = vadd.f32 %v3076_v52, %v1712_v63  ;;  %1808 = vmax.xlane.f32.xlu1 %v4249_v0 }
 0x65d   : > { %1932 = vmatmul.f32.gmra.mxu2 %v3338_v2 }
 0x65e   : > { %v1761_v3 = vmul.f32 0.2, %v1745_v4 }
 0x660   : > { %v4254_v54 = vmax.f32 %v1745_v4, %v1761_v3  ;;  %v3085_v4 = vld [vmem:[%s4736_s5 + $0x50] sm:$0xff]  ;;  %v3084_v3 = vld [vmem:[%s4736_s5 + $0x48] sm:$0xff] }
 0x662   : > { %1804 = vmax.xlane.f32.xlu2 %v4254_v54 }
 0x665   : > { %1935 = vmatmul.f32.gmra.mxu2 %v3340_v58 }
 0x66a   : > { %1806 = vmax.xlane.f32.xlu2 %v4257_v8 }
 0x67e   : > { %v1791_v62 = vpop.xlane.xlu0 %1790 }
 0x67f   : > { %v1818_v9 = vsub.f32 %v4207_v39, %v1791_v62 }
 0x681   : > { %v1838_v10 = vmul.f32 1.442695, %v1818_v9 }
 0x683   : > { %3341 = vpow2.f32 %v1838_v10 }
 0x684   : > { %v1797_v20 = vpop.xlane.xlu1 %1796 }
 0x685   : > { %v1821_v39 = vsub.f32 %v4213_v15, %v1797_v20 }
 0x686   : > { %v1793_v11 = vpop.xlane.xlu0 %1792 }
 0x687   : > { %v1819_v12 = vsub.f32 %v4217_v17, %v1793_v11  ;;  %v1844_v25 = vmul.f32 1.442695, %v1821_v39  ;;  %v4300_v39 = vld [vmem:[%s4740_s9 + $0x1] ss:$0 sm:$0xff] }
 0x689   : > { %v3342_v13 = vpop.eup %3341  ;;  %v1840_v16 = vmul.f32 1.442695, %v1819_v12  ;;  %v1799_v27 = vpop.xlane.xlu2 %1798 }
 0x68a   : > { %1938 = vmatmul.f32.gmra.mxu2 %v3342_v13  ;;  %v1822_v17 = vsub.f32 %v4221_v23, %v1799_v27 }
 0x68b   : > { %3343 = vpow2.f32 %v1840_v16 }
 0x68e   : > { %v1795_v18 = vpop.xlane.xlu0 %1794 }
 0x68f   : > { %v1820_v19 = vsub.f32 %v4224_v29, %v1795_v18  ;;  %v1846_v29 = vmul.f32 1.442695, %v1822_v17 }
 0x691   : > { %v3344_v21 = vpop.eup %3343  ;;  %v1842_v22 = vmul.f32 1.442695, %v1820_v19  ;;  %v1803_v44 = vpop.xlane.xlu2 %1802  ;;  %v4295_v19 = vld [vmem:[%s4739_s8 + $0x1] ss:$0 sm:$0xff] }
 0x692   : > { %1941 = vmatmul.f32.gmra.mxu2 %v3344_v21 }
 0x693   : > { %3345 = vpow2.f32 %v1842_v22 }
 0x694   : > { %3347 = vpow2.f32 %v1844_v25 }
 0x695   : > { %3349 = vpow2.f32 %v1846_v29 }
 0x699   : > { %v3346_v28 = vpop.eup %3345 }
 0x69a   : > { %1944 = vmatmul.f32.gmra.mxu2 %v3346_v28  ;;  %v3348_v36 = vpop.eup %3347 }
 0x69b   : > { %v3350_v23 = vpop.eup %3349 }
 0x69c   : > { %v1698_v34 = vpop.permute.xlu1 %1697 }
 0x69d   : > { %v1716_v35 = vadd.f32 %v4178_v14, %v1698_v34 }
 0x69f   : > { %v1749_v24 = vadd.f32 %v3080_v33, %v1716_v35 }
 0x6a1   : > { %v1693_v26 = vpop.permute.xlu0 %1692  ;;  %v1765_v40 = vmul.f32 0.2, %v1749_v24 }
 0x6a2   : > { %v1715_v15 = vadd.f32 %v4178_v14, %v1693_v26  ;;  %1947 = vmatmul.f32.gmra.mxu2 %v3348_v36  ;;  %v1824_v14 = vsub.f32 %v4227_v30, %v1803_v44 }
 0x6a3   : > { %v1781_v41 = vmax.f32 %v1749_v24, %v1765_v40 }
 0x6a4   : > { %v1748_v42 = vadd.f32 %v3079_v38, %v1715_v15  ;;  %v1850_v45 = vmul.f32 1.442695, %v1824_v14 }
 0x6a5   : > { %1812 = vmax.xlane.f32.xlu0 %v1781_v41 }
 0x6a6   : > { %v1764_v43 = vmul.f32 0.2, %v1748_v42  ;;  %3351 = vpow2.f32 %v1850_v45 }
 0x6a8   : > { %v4269_v5 = vmax.f32 %v1748_v42, %v1764_v43 }
 0x6aa   : > { %1950 = vmatmul.f32.gmra.mxu2 %v3350_v23  ;;  %1810 = vmax.xlane.f32.xlu2 %v4269_v5 }
 0x6ac   : > { %v3352_v37 = vpop.eup %3351 }
 0x6ad   : > { %1864 = vadd.xlane.f32.xlu0 %v4239_v49 }
 0x6b2   : > { %1862 = vadd.xlane.f32.xlu2 %v4233_v61 }
 0x6b5   : > { %1868 = vadd.xlane.f32.xlu0 %v3340_v58 }
 0x6ba   : > { %1866 = vadd.xlane.f32.xlu2 %v3338_v2 }
 0x6bd   : > { %1872 = vadd.xlane.f32.xlu0 %v3344_v21 }
 0x6c2   : > { %1870 = vadd.xlane.f32.xlu2 %v3342_v13 }
 0x6c5   : > { %1876 = vadd.xlane.f32.xlu0 %v3348_v36 }
 0x6ca   : > { %1874 = vadd.xlane.f32.xlu2 %v3346_v28 }
 0x6cc   : > { %v1801_v46 = vpop.xlane.xlu0 %1800 }
 0x6cd   : > { %1882 = vadd.xlane.f32.xlu0 %v3352_v37  ;;  %v1823_v47 = vsub.f32 %v4244_v57, %v1801_v46 }
 0x6cf   : > { %v1848_v32 = vmul.f32 1.442695, %v1823_v47  ;;  %v1809_v48 = vpop.xlane.xlu1 %1808 }
 0x6d0   : > { %v1827_v61 = vsub.f32 %v4249_v0, %v1809_v48  ;;  %v1927_v63 = vpop.f32.mrf.mxu2  ;;  %v3086_v0 = vld [vmem:[%s4736_s5 + $0x58] sm:$0xff] }
 0x6d1   : > { %3353 = vpow2.f32 %v1848_v32  ;;  %2114 = vmatpush.msrb.mxu3 %v3086_v0 }
 0x6d2   : > { %v1856_v49 = vmul.f32 1.442695, %v1827_v61  ;;  %1878 = vadd.xlane.f32.xlu2 %v3350_v23 }
 0x6d3   : > { %2115 = vmatpush.msrb.mxu3 %v3085_v4 }
 0x6d4   : > { %3355 = vpow2.f32 %v1856_v49 }
 0x6d5   : > { %v1805_v50 = vpop.xlane.xlu2 %1804  ;;  %2116 = vmatpush.msrb.mxu3 %v3084_v3 }
 0x6d6   : > { %v1825_v30 = vsub.f32 %v4254_v54, %v1805_v50 }
 0x6d7   : > { %v3354_v55 = vpop.eup %3353  ;;  %2117 = vmatpush.msrb.mxu3 %v3083_v6 }
 0x6d8   : > { %v1852_v51 = vmul.f32 1.442695, %v1825_v30  ;;  %1880 = vadd.xlane.f32.xlu1 %v3354_v55  ;;  %1953 = vmatmul.f32.gmra.mxu2 %v3354_v55  ;;  %v1930_v2 = vpop.f32.mrf.mxu2 }
 0x6da   : > { %v3356_v31 = vpop.eup %3355  ;;  %3357 = vpow2.f32 %v1852_v51 }
 0x6db   : > { %1888 = vadd.xlane.f32.xlu0 %v3356_v31 }
 0x6dd   : > { %v1807_v59 = vpop.xlane.xlu2 %1806 }
 0x6de   : > { %v1826_v57 = vsub.f32 %v4257_v8, %v1807_v59 }
 0x6e0   : > { %v3358_v52 = vpop.eup %3357  ;;  %v1854_v60 = vmul.f32 1.442695, %v1826_v57  ;;  %1956 = vmatmul.f32.gmra.mxu2 %v3352_v37  ;;  %v1933_v62 = vpop.f32.mrf.mxu2 }
 0x6e1   : > { %1884 = vadd.xlane.f32.xlu2 %v3358_v52 }
 0x6e2   : > { %3359 = vpow2.f32 %v1854_v60 }
 0x6e8   : > { %v3360_v53 = vpop.eup %3359  ;;  %1959 = vmatmul.f32.gmra.mxu2 %v3358_v52  ;;  %v1936_v18 = vpop.f32.mrf.mxu2 }
 0x6e9   : > { %1886 = vadd.xlane.f32.xlu1 %v3360_v53 }
 0x6f0   : > { %1962 = vmatmul.f32.gmra.mxu2 %v3360_v53 }
 0x6f8   : > { %1965 = vmatmul.f32.gmra.mxu2 %v3356_v31 }
 0x70d   : > { %v1939_v35 = vpop.f32.mrf.mxu2 }
 0x715   : > { %v1942_v15 = vpop.f32.mrf.mxu2 }
 0x718   : > { %v1813_v1 = vpop.xlane.xlu0 %1812 }
 0x719   : > { %v1829_v56 = vsub.f32 %v1781_v41, %v1813_v1 }
 0x71b   : > { %v1860_v54 = vmul.f32 1.442695, %v1829_v56 }
 0x71d   : > { %3361 = vpow2.f32 %v1860_v54  ;;  %v1811_v58 = vpop.xlane.xlu2 %1810  ;;  %v1945_v37 = vpop.f32.mrf.mxu2 }
 0x71e   : > { %v1828_v7 = vsub.f32 %v4269_v5, %v1811_v58 }
 0x720   : > { %v1858_v8 = vmul.f32 1.442695, %v1828_v7  ;;  %v1865_v9 = vpop.xlane.xlu0 %1864 }
 0x722   : > { %3363 = vpow2.f32 %v1858_v8 }
 0x723   : > { %v3362_v10 = vpop.eup %3361  ;;  %3365 = vrcp.f32 %v1865_v9 }
 0x724   : > { %1892 = vadd.xlane.f32.xlu1 %v3362_v10 }
 0x725   : > { %v1863_v11 = vpop.xlane.xlu2 %1862  ;;  %v1948_v50 = vpop.f32.mrf.mxu2 }
 0x726   : > { %3367 = vrcp.f32 %v1863_v11 }
 0x728   : > { %v3364_v12 = vpop.eup %3363  ;;  %v1869_v28 = vpop.xlane.xlu0 %1868 }
 0x729   : > { %1890 = vadd.xlane.f32.xlu2 %v3364_v12  ;;  %1968 = vmatmul.f32.gmra.mxu2 %v3364_v12  ;;  %v3366_v13 = vpop.eup %3365 }
 0x72a   : > { %v1976_v22 = vmul.f32 %v3366_v13, %v1930_v2 }
 0x72c   : > { %v3368_v16 = vpop.eup %3367  ;;  %v1997_v33 = vmul.f32 %v4295_v19, %v1976_v22 }
 0x72d   : > { %v1975_v20 = vmul.f32 %v3368_v16, %v1927_v63  ;;  %v1867_v21 = vpop.xlane.xlu2 %1866  ;;  %v1951_v0 = vpop.f32.mrf.mxu2 }
 0x72e   : > { %3369 = vrcp.f32 %v1867_v21  ;;  %v2018_v24 = vadd.f32 %v4300_v39, %v1997_v33 }
 0x72f   : > { %v1996_v25 = vmul.f32 %v4295_v19, %v1975_v20  ;;  %3371 = vrcp.f32 %v1869_v28 }
 0x730   : > { %v2034_v38 = vmax.f32 %v2018_v24, 0.0  ;;  %v1873_v43 = vpop.xlane.xlu0 %1872 }
 0x731   : > { %v2017_v27 = vadd.f32 %v4300_v39, %v1996_v25  ;;  %1971 = vmatmul.f32.gmra.mxu2 %v3362_v10 }
 0x733   : > { %v2033_v17 = vmax.f32 %v2017_v27, 0.0 }
 0x734   : > { %v3370_v34 = vpop.eup %3369 }
 0x735   : > { %3087 = vmatmul.msk.f32.vlgmr.msrb.gmra.mxu3 %vm678_vm1, %v2033_v17  ;;  %v1977_v29 = vmul.f32 %v3370_v34, %v1933_v62  ;;  %v1871_v36 = vpop.xlane.xlu2 %1870  ;;  %v3372_v40 = vpop.eup %3371 }
 0x736   : > { %3373 = vrcp.f32 %v1871_v36  ;;  %v1978_v41 = vmul.f32 %v3372_v40, %v1936_v18 }
 0x737   : > { %v1998_v26 = vmul.f32 %v4295_v19, %v1977_v29  ;;  %3375 = vrcp.f32 %v1873_v43 }
 0x738   : > { %v1999_v23 = vmul.f32 %v4295_v19, %v1978_v41  ;;  %v1877_v55 = vpop.xlane.xlu0 %1876 }
 0x739   : > { %v2019_v42 = vadd.f32 %v4300_v39, %v1998_v26 }
 0x73a   : > { %v2020_v45 = vadd.f32 %v4300_v39, %v1999_v23 }
 0x73b   : > { %v2035_v5 = vmax.f32 %v2019_v42, 0.0 }
 0x73c   : > { %v3374_v44 = vpop.eup %3373  ;;  %v2036_v47 = vmax.f32 %v2020_v45, 0.0 }
 0x73d   : > { %3088 = vmatmul.msk.f32.gmra.mxu3 %vm678_vm1, %v2034_v38  ;;  %v1979_v14 = vmul.f32 %v3374_v44, %v1939_v35  ;;  %v1875_v46 = vpop.xlane.xlu2 %1874  ;;  %v3376_v48 = vpop.eup %3375 }
 0x73e   : > { %3377 = vrcp.f32 %v1875_v46  ;;  %v1980_v61 = vmul.f32 %v3376_v48, %v1942_v15  ;;  %v3106_v46 = vld [vmem:[%s4738_s7 + $0x58] sm:$0xff]  ;;  %v3105_v48 = vld [vmem:[%s4738_s7 + $0x50] sm:$0xff] }
 0x73f   : > { %v2000_v32 = vmul.f32 %v4295_v19, %v1979_v14  ;;  %3379 = vrcp.f32 %v1877_v55  ;;  %2232 = vmatpush.msra.mxu0 %v3106_v46 }
 0x740   : > { %v2001_v30 = vmul.f32 %v4295_v19, %v1980_v61  ;;  %v1883_v9 = vpop.xlane.xlu0 %1882  ;;  %v3104_v61 = vld [vmem:[%s4738_s7 + $0x48] sm:$0xff] }
 0x741   : > { %v2021_v49 = vadd.f32 %v4300_v39, %v2000_v32  ;;  %2233 = vmatpush.msra.mxu0 %v3105_v48  ;;  %v3145_v48 = vld [vmem:[%s3743_s1 + $0x120] sm:$0xff] }
 0x742   : > { %v2022_v57 = vadd.f32 %v4300_v39, %v2001_v30 }
 0x743   : > { %v2037_v51 = vmax.f32 %v2021_v49, 0.0  ;;  %v3103_v49 = vld [vmem:[%s4738_s7 + $0x40] sm:$0xff]  ;;  %2234 = vmatpush.msra.mxu0 %v3104_v61 }
 0x744   : > { %v3378_v31 = vpop.eup %3377  ;;  %v2038_v53 = vmax.f32 %v2022_v57, 0.0 }
 0x745   : > { %3089 = vmatmul.msk.f32.gmra.mxu3 %vm678_vm1, %v2035_v5  ;;  %v1981_v59 = vmul.f32 %v3378_v31, %v1945_v37  ;;  %v1879_v60 = vpop.xlane.xlu2 %1878  ;;  %v3380_v63 = vpop.eup %3379  ;;  %2235 = vmatpush.msra.mxu0 %v3103_v49  ;;  %v3144_v49 = vld [vmem:[%s3743_s1 + $0x118] sm:$0xff] }
 0x746   : > { %3381 = vrcp.f32 %v1879_v60  ;;  %v1982_v2 = vmul.f32 %v3380_v63, %v1948_v50 }
 0x747   : > { %v2002_v52 = vmul.f32 %v4295_v19, %v1981_v59 }
 0x748   : > { %v2003_v4 = vmul.f32 %v4295_v19, %v1982_v2 }
 0x749   : > { %v2023_v1 = vadd.f32 %v4300_v39, %v2002_v52 }
 0x74a   : > { %v2024_v7 = vadd.f32 %v4300_v39, %v2003_v4 }
 0x74b   : > { %v2039_v56 = vmax.f32 %v2023_v1, 0.0  ;;  %v1881_v54 = vpop.xlane.xlu1 %1880 }
 0x74c   : > { %v3382_v3 = vpop.eup %3381  ;;  %3383 = vrcp.f32 %v1881_v54  ;;  %v2040_v62 = vmax.f32 %v2024_v7, 0.0 }
 0x74d   : > { %3090 = vmatmul.msk.f32.gmra.mxu3 %vm678_vm1, %v2036_v47  ;;  %v1983_v58 = vmul.f32 %v3382_v3, %v1951_v0  ;;  %3385 = vrcp.f32 %v1883_v9 }
 0x74e   : > { %v1889_v26 = vpop.xlane.xlu0 %1888 }
 0x74f   : > { %v2004_v8 = vmul.f32 %v4295_v19, %v1983_v58 }
 0x751   : > { %v2025_v13 = vadd.f32 %v4300_v39, %v2004_v8 }
 0x752   : > { %v3384_v10 = vpop.eup %3383 }
 0x753   : > { %v2041_v18 = vmax.f32 %v2025_v13, 0.0  ;;  %v3386_v21 = vpop.eup %3385 }
 0x754   : > { %v1885_v20 = vpop.xlane.xlu2 %1884 }
 0x755   : > { %3091 = vmatmul.msk.f32.gmra.mxu3 %vm678_vm1, %v2037_v51  ;;  %3387 = vrcp.f32 %v1885_v20 }
 0x75b   : > { %v1954_v6 = vpop.f32.mrf.mxu2  ;;  %v3388_v34 = vpop.eup %3387 }
 0x75c   : > { %v1984_v12 = vmul.f32 %v3384_v10, %v1954_v6  ;;  %v1887_v33 = vpop.xlane.xlu1 %1886 }
 0x75d   : > { %3092 = vmatmul.msk.f32.gmra.mxu3 %vm678_vm1, %v2038_v53  ;;  %3389 = vrcp.f32 %v1887_v33  ;;  %v3123_v33 = vld [vmem:[%s4737_s6 + $0x2] sm:$0x1] }
 0x75e   : > { %v2005_v16 = vmul.f32 %v4295_v19, %v1984_v12  ;;  %3391 = vrcp.f32 %v1889_v26 }
 0x760   : > { %v2026_v22 = vadd.f32 %v4300_v39, %v2005_v16 }
 0x762   : > { %v2042_v28 = vmax.f32 %v2026_v22, 0.0 }
 0x763   : > { %v1957_v11 = vpop.f32.mrf.mxu2  ;;  %v3390_v40 = vpop.eup %3389 }
 0x764   : > { %v1985_v25 = vmul.f32 %v3386_v21, %v1957_v11  ;;  %v3392_v23 = vpop.eup %3391 }
 0x765   : > { %3093 = vmatmul.msk.f32.gmra.mxu3 %vm678_vm1, %v2039_v56 }
 0x766   : > { %v2006_v17 = vmul.f32 %v4295_v19, %v1985_v25 }
 0x768   : > { %v2027_v35 = vadd.f32 %v4300_v39, %v2006_v17 }
 0x76a   : > { %v2043_v36 = vmax.f32 %v2027_v35, 0.0 }
 0x76b   : > { %v1960_v27 = vpop.f32.mrf.mxu2 }
 0x76c   : > { %v1986_v29 = vmul.f32 %v3388_v34, %v1960_v27 }
 0x76d   : > { %3094 = vmatmul.msk.f32.gmra.mxu3 %vm678_vm1, %v2040_v62 }
 0x76e   : > { %v2007_v38 = vmul.f32 %v4295_v19, %v1986_v29 }
 0x770   : > { %v2028_v15 = vadd.f32 %v4300_v39, %v2007_v38 }
 0x772   : > { %v2044_v42 = vmax.f32 %v2028_v15, 0.0 }
 0x773   : > { %v1963_v24 = vpop.f32.mrf.mxu2 }
 0x774   : > { %v1987_v41 = vmul.f32 %v3390_v40, %v1963_v24 }
 0x775   : > { %3095 = vmatmul.msk.f32.gmra.mxu3 %vm678_vm1, %v2041_v18 }
 0x776   : > { %v2008_v43 = vmul.f32 %v4295_v19, %v1987_v41  ;;  %v3143_v41 = vld [vmem:[%s3743_s1 + $0x110] sm:$0xff] }
 0x778   : > { %v2029_v44 = vadd.f32 %v4300_v39, %v2008_v43  ;;  %v3141_v43 = vld [vmem:[%s3743_s1 + $0x100] sm:$0xff] }
 0x77a   : > { %v2045_v45 = vmax.f32 %v2029_v44, 0.0 }
 0x77b   : > { %v1966_v5 = vpop.f32.mrf.mxu2 }
 0x77c   : > { %v1988_v14 = vmul.f32 %v3392_v23, %v1966_v5 }
 0x77d   : > { %3096 = vmatmul.msk.f32.gmra.mxu3 %vm678_vm1, %v2042_v28 }
 0x77e   : > { %v2009_v37 = vmul.f32 %v4295_v19, %v1988_v14 }
 0x780   : > { %v2030_v47 = vadd.f32 %v4300_v39, %v2009_v37 }
 0x782   : > { %v2046_v32 = vmax.f32 %v2030_v47, 0.0 }
 0x785   : > { %3097 = vmatmul.msk.f32.gmra.mxu3 %vm678_vm1, %v2043_v36 }
 0x78d   : > { %3098 = vmatmul.msk.f32.gmra.mxu3 %vm678_vm1, %v2044_v42  ;;  %v3142_v42 = vld [vmem:[%s3743_s1 + $0x108] sm:$0xff] }
 0x795   : > { %3099 = vmatmul.msk.f32.gmra.mxu3 %vm678_vm1, %v2045_v45 }
 0x797   : > { %v1893_v30 = vpop.xlane.xlu1 %1892 }
 0x79c   : > { %v1891_v50 = vpop.xlane.xlu2 %1890 }
 0x79d   : > { %3100 = vmatmul.msk.f32.gmra.mxu3 %vm678_vm1, %v2046_v32  ;;  %3393 = vrcp.f32 %v1891_v50 }
 0x79e   : > { %3395 = vrcp.f32 %v1893_v30 }
 0x7a3   : > { %v3394_v55 = vpop.eup %3393 }
 0x7a4   : > { %v3396_v60 = vpop.eup %3395 }
 0x7ac   : > { %v1969_v51 = vpop.f32.mrf.mxu2 }
 0x7ad   : > { %v1989_v31 = vmul.f32 %v3394_v55, %v1969_v51 }
 0x7af   : > { %v2010_v59 = vmul.f32 %v4295_v19, %v1989_v31 }
 0x7b1   : > { %v2031_v57 = vadd.f32 %v4300_v39, %v2010_v59 }
 0x7b3   : > { %v2047_v52 = vmax.f32 %v2031_v57, 0.0 }
 0x7b4   : > { %v1972_v53 = vpop.f32.mrf.mxu2 }
 0x7b5   : > { %v1990_v63 = vmul.f32 %v3396_v60, %v1972_v53  ;;  %3101 = vmatmul.msk.f32.gmra.mxu3 %vm678_vm1, %v2047_v52 }
 0x7b7   : > { %v2011_v0 = vmul.f32 %v4295_v19, %v1990_v63 }
 0x7b8   : > { %v4360_v2 = vpop.f32.mrf.mxu3 }
 0x7b9   : > { %v2032_v1 = vadd.f32 %v4300_v39, %v2011_v0  ;;  %3107 = vmatmul.msk.f32.vlgmr.msra.gmra.mxu0 %vm678_vm1, %v4360_v2 }
 0x7bb   : > { %v2048_v4 = vmax.f32 %v2032_v1, 0.0 }
 0x7bd   : > { %3102 = vmatmul.msk.f32.gmra.mxu3 %vm678_vm1, %v2048_v4  ;;  %v3147_v4 = vld [vmem:[%s3743_s1 + $0x130] sm:$0xff] }
 0x7c0   : > { %v4366_v56 = vpop.f32.mrf.mxu3 }
 0x7c1   : > { %3108 = vmatmul.msk.f32.gmra.mxu0 %vm678_vm1, %v4366_v56 }
 0x7c8   : > { %v4370_v3 = vpop.f32.mrf.mxu3 }
 0x7c9   : > { %3109 = vmatmul.msk.f32.gmra.mxu0 %vm678_vm1, %v4370_v3 }
 0x7d0   : > { %v4374_v19 = vpop.f32.mrf.mxu3 }
 0x7d1   : > { %3110 = vmatmul.msk.f32.gmra.mxu0 %vm678_vm1, %v4374_v19 }
 0x7d8   : > { %v4378_v39 = vpop.f32.mrf.mxu3 }
 0x7d9   : > { %3111 = vmatmul.msk.f32.gmra.mxu0 %vm678_vm1, %v4378_v39 }
 0x7e0   : > { %v4382_v6 = vpop.f32.mrf.mxu3 }
 0x7e1   : > { %3112 = vmatmul.msk.f32.gmra.mxu0 %vm678_vm1, %v4382_v6 }
 0x7e8   : > { %v4386_v54 = vpop.f32.mrf.mxu3 }
 0x7e9   : > { %3113 = vmatmul.msk.f32.gmra.mxu0 %vm678_vm1, %v4386_v54 }
 0x7f0   : > { %v4390_v58 = vpop.f32.mrf.mxu3 }
 0x7f1   : > { %3114 = vmatmul.msk.f32.gmra.mxu0 %vm678_vm1, %v4390_v58 }
 0x7f8   : > { %v2143_v7 = vpop.f32.mrf.mxu3 }
 0x7f9   : > { %3115 = vmatmul.msk.f32.gmra.mxu0 %vm678_vm1, %v2143_v7 }
 0x800   : > { %v2146_v8 = vpop.f32.mrf.mxu3 }
 0x801   : > { %3116 = vmatmul.msk.f32.gmra.mxu0 %vm678_vm1, %v2146_v8 }
 0x808   : > { %v2149_v62 = vpop.f32.mrf.mxu3 }
 0x809   : > { %3117 = vmatmul.msk.f32.gmra.mxu0 %vm678_vm1, %v2149_v62 }
 0x810   : > { %v2152_v9 = vpop.f32.mrf.mxu3 }
 0x811   : > { %3118 = vmatmul.msk.f32.gmra.mxu0 %vm678_vm1, %v2152_v9 }
 0x818   : > { %v2155_v10 = vpop.f32.mrf.mxu3 }
 0x819   : > { %3119 = vmatmul.msk.f32.gmra.mxu0 %vm678_vm1, %v2155_v10 }
 0x820   : > { %v2158_v11 = vpop.f32.mrf.mxu3 }
 0x821   : > { %3120 = vmatmul.msk.f32.gmra.mxu0 %vm678_vm1, %v2158_v11 }
 0x836   : > { %v2237_v12 = vpop.f32.mrf.mxu0 }
 0x837   : > { %2312 = vperm.xlu0 %3259, %v2237_v12  }
 0x838   : > { %v2161_v13 = vpop.f32.mrf.mxu3 }
 0x839   : > { %3121 = vmatmul.msk.f32.gmra.mxu0 %vm678_vm1, %v2161_v13 }
 0x83e   : > { %v2240_v16 = vpop.f32.mrf.mxu0 }
 0x83f   : > { %2317 = vperm.xlu2 %3261, %v2240_v16  }
 0x840   : > { %v2164_v18 = vpop.f32.mrf.mxu3 }
 0x841   : > { %3122 = vmatmul.msk.f32.gmra.mxu0 %vm678_vm1, %v2164_v18  ;;  %3124 = vmatpush.xpose.msk.msra.mxu1 %vm678_vm1, %v2164_v18 }
 0x845   : > { %3125 = vmatpush.xpose.msk.msra.mxu1 %vm678_vm1, %v2161_v13 }
 0x846   : > { %v2243_v20 = vpop.f32.mrf.mxu0 }
 0x847   : > { %2322 = vperm.xlu1 %3260, %v2243_v20  }
 0x849   : > { %3126 = vmatpush.xpose.msk.msra.mxu1 %vm678_vm1, %v2158_v11 }
 0x84d   : > { %3127 = vmatpush.xpose.msk.msra.mxu1 %vm678_vm1, %v2155_v10 }
 0x84e   : > { %v2246_v21 = vpop.f32.mrf.mxu0 }
 0x84f   : > { %2327 = vperm.xlu0 %3259, %v2246_v21  }
 0x851   : > { %3128 = vmatpush.xpose.msk.msra.mxu1 %vm678_vm1, %v2152_v9 }
 0x855   : > { %3129 = vmatpush.xpose.msk.msra.mxu1 %vm678_vm1, %v2149_v62 }
 0x856   : > { %v2249_v22 = vpop.f32.mrf.mxu0 }
 0x857   : > { %2332 = vperm.xlu2 %3261, %v2249_v22  }
 0x859   : > { %3130 = vmatpush.xpose.msk.msra.mxu1 %vm678_vm1, %v2146_v8 }
 0x85d   : > { %3131 = vmatpush.xpose.msk.msra.mxu1 %vm678_vm1, %v2143_v7 }
 0x85e   : > { %v2252_v25 = vpop.f32.mrf.mxu0 }
 0x85f   : > { %2337 = vperm.xlu0 %3259, %v2252_v25   ;;  %v3150_v25 = vld [vmem:[%s3743_s1 + $0x148] sm:$0xff] }
 0x861   : > { %3132 = vmatpush.xpose.msk.msra.mxu1 %vm678_vm1, %v4390_v58 }
 0x865   : > { %3133 = vmatpush.xpose.msk.msra.mxu1 %vm678_vm1, %v4386_v54 }
 0x866   : > { %v2255_v27 = vpop.f32.mrf.mxu0 }
 0x867   : > { %2342 = vperm.xlu2 %3261, %v2255_v27  }
 0x869   : > { %3134 = vmatpush.xpose.msk.msra.mxu1 %vm678_vm1, %v4382_v6 }
 0x86d   : > { %3135 = vmatpush.xpose.msk.msra.mxu1 %vm678_vm1, %v4378_v39 }
 0x86e   : > { %v2258_v28 = vpop.f32.mrf.mxu0 }
 0x86f   : > { %2347 = vperm.xlu2 %3261, %v2258_v28   ;;  %v3151_v28 = vld [vmem:[%s3743_s1 + $0x150] sm:$0xff] }
 0x871   : > { %3136 = vmatpush.xpose.msk.msra.mxu1 %vm678_vm1, %v4374_v19 }
 0x875   : > { %3137 = vmatpush.xpose.msk.msra.mxu1 %vm678_vm1, %v4370_v3 }
 0x876   : > { %v2261_v17 = vpop.f32.mrf.mxu0 }
 0x877   : > { %2352 = vperm.xlu1 %3260, %v2261_v17  }
 0x879   : > { %3138 = vmatpush.xpose.msk.msra.mxu1 %vm678_vm1, %v4366_v56 }
 0x87d   : > { %3139 = vmatpush.xpose.msk.msra.mxu1 %vm678_vm1, %v4360_v2 }
 0x87e   : > { %v2264_v34 = vpop.f32.mrf.mxu0 }
 0x87f   : > { %2357 = vperm.xlu0 %3259, %v2264_v34  }
 0x880   : > { %3140 = vmatmul.msk.f32.vlgmr.msra.gmra.mxu1 %vm678_vm1, %v3123_v33 }
 0x881   : > { %2600 = vmatpush.msrb.mxu1 %v2164_v18 }
 0x883   : > { %2601 = vmatpush.msrb.mxu1 %v2161_v13  ;;  %v3148_v13 = vld [vmem:[%s3743_s1 + $0x138] sm:$0xff] }
 0x885   : > { %2602 = vmatpush.msrb.mxu1 %v2158_v11 }
 0x886   : > { %v2267_v35 = vpop.f32.mrf.mxu0 }
 0x887   : > { %2603 = vmatpush.msrb.mxu1 %v2155_v10  ;;  %2362 = vperm.xlu1 %3260, %v2267_v35  }
 0x889   : > { %2604 = vmatpush.msrb.mxu1 %v2152_v9 }
 0x88b   : > { %2605 = vmatpush.msrb.mxu1 %v2149_v62 }
 0x88d   : > { %2606 = vmatpush.msrb.mxu1 %v2146_v8 }
 0x88e   : > { %v2270_v29 = vpop.f32.mrf.mxu0 }
 0x88f   : > { %2607 = vmatpush.msrb.mxu1 %v2143_v7 }
 0x891   : > { %2608 = vmatpush.msrb.mxu1 %v4390_v58 }
 0x893   : > { %2609 = vmatpush.msrb.mxu1 %v4386_v54 }
 0x895   : > { %2610 = vmatpush.msrb.mxu1 %v4382_v6 }
 0x896   : > { %v2273_v24 = vpop.f32.mrf.mxu0 }
 0x897   : > { %2611 = vmatpush.msrb.mxu1 %v4378_v39  ;;  %2372 = vperm.xlu2 %3261, %v2273_v24  }
 0x899   : > { %2612 = vmatpush.msrb.mxu1 %v4374_v19  ;;  %v2318_v36 = vpop.permute.xlu2 %2317 }
 0x89b   : > { %2613 = vmatpush.msrb.mxu1 %v4370_v3 }
 0x89d   : > { %2614 = vmatpush.msrb.mxu1 %v4366_v56  ;;  %v3146_v56 = vld [vmem:[%s3743_s1 + $0x128] sm:$0xff] }
 0x89e   : > { %v2276_v62 = vpop.f32.mrf.mxu0 }
 0x89f   : > { %2615 = vmatpush.msrb.mxu1 %v4360_v2 }
 0x8a9   : > { %v2313_v38 = vpop.permute.xlu0 %2312 }
 0x8b1   : > { %v2333_v5 = vpop.permute.xlu2 %2332 }
 0x8b6   : > { %v2279_v9 = vpop.f32.mrf.mxu0 }
 0x8b9   : > { %v2323_v15 = vpop.permute.xlu1 %2322 }
 0x8c1   : > { %v2328_v45 = vpop.permute.xlu0 %2327  ;;  %v2343_v60 = vpop.permute.xlu2 %2342 }
 0x8c9   : > { %v2348_v10 = vpop.permute.xlu2 %2347 }
 0x8d1   : > { %v2338_v53 = vpop.permute.xlu0 %2337 }
 0x8e9   : > { %v2353_v12 = vpop.permute.xlu1 %2352 }
 0x8f1   : > { %v2358_v18 = vpop.permute.xlu0 %2357 }
 0x8f9   : > { %v2363_v22 = vpop.permute.xlu1 %2362 }
 0x8fd   : > { %v2307_v26 = vpop.f32.mrf.mxu1 }
 0x8fe   : > { %v4438_v40 = vperm.slane %v2307_v26, 0 }
 0x900   : > { %v2393_v23 = vadd.f32 %v4438_v40, %v2323_v15  ;;  %v2392_v44 = vadd.f32 %v4438_v40, %v2318_v36  ;;  %v2391_v14 = vadd.f32 %v4438_v40, %v2313_v38  ;;  %v2395_v37 = vadd.f32 %v4438_v40, %v2333_v5  ;;  %v2373_v5 = vpop.permute.xlu2 %2372 }
 0x901   : > { %v2394_v61 = vadd.f32 %v4438_v40, %v2328_v45  ;;  %v2397_v2 = vadd.f32 %v4438_v40, %v2343_v60  ;;  %v2396_v1 = vadd.f32 %v4438_v40, %v2338_v53  ;;  %v2398_v11 = vadd.f32 %v4438_v40, %v2348_v10  ;;  %v3152_v53 = vld [vmem:[%s3743_s1 + $0x158] sm:$0xff] }
 0x902   : > { %v2426_v46 = vadd.f32 %v3143_v41, %v2393_v23  ;;  %v2425_v47 = vadd.f32 %v3142_v42, %v2392_v44  ;;  %v2424_v32 = vadd.f32 %v3141_v43, %v2391_v14  ;;  %v2428_v51 = vadd.f32 %v3145_v48, %v2395_v37  ;;  %v2282_v43 = vpop.f32.mrf.mxu0 }
 0x903   : > { %v2427_v52 = vadd.f32 %v3144_v49, %v2394_v61  ;;  %v2430_v39 = vadd.f32 %v3147_v4, %v2397_v2  ;;  %v2429_v6 = vadd.f32 %v3146_v56, %v2396_v1  ;;  %v2431_v16 = vadd.f32 %v3148_v13, %v2398_v11 }
 0x904   : > { %v2442_v50 = vmul.f32 0.2, %v2426_v46  ;;  %v2441_v30 = vmul.f32 0.2, %v2425_v47  ;;  %v2440_v55 = vmul.f32 0.2, %v2424_v32  ;;  %v2400_v21 = vadd.f32 %v4438_v40, %v2358_v18 }
 0x905   : > { %v2444_v63 = vmul.f32 0.2, %v2428_v51  ;;  %v2443_v0 = vmul.f32 0.2, %v2427_v52  ;;  %v2446_v54 = vmul.f32 0.2, %v2430_v39  ;;  %v2401_v27 = vadd.f32 %v4438_v40, %v2363_v22 }
 0x906   : > { %v4450_v31 = vmax.f32 %v2426_v46, %v2442_v50  ;;  %v4452_v59 = vmax.f32 %v2425_v47, %v2441_v30  ;;  %v4454_v57 = vmax.f32 %v2424_v32, %v2440_v55  ;;  %v2445_v58 = vmul.f32 0.2, %v2429_v6  ;;  %v3153_v50 = vld [vmem:[%s3743_s1 + $0x160] sm:$0xff]  ;;  %v3155_v18 = vld [vmem:[%s3743_s1 + $0x170] sm:$0xff] }
 0x907   : > { %v4463_v3 = vmax.f32 %v2428_v51, %v2444_v63  ;;  %v4465_v19 = vmax.f32 %v2427_v52, %v2443_v0  ;;  %v4469_v7 = vmax.f32 %v2430_v39, %v2446_v54  ;;  %v2447_v20 = vmul.f32 0.2, %v2431_v16  ;;  %v3154_v54 = vld [vmem:[%s3743_s1 + $0x168] sm:$0xff] }
 0x908   : > { %2476 = vmax.xlane.f32.xlu2 %v4450_v31  ;;  %2474 = vmax.xlane.f32.xlu0 %v4452_v59  ;;  %v4471_v8 = vmax.f32 %v2429_v6, %v2445_v58  ;;  %v2433_v33 = vadd.f32 %v3150_v25, %v2400_v21  ;;  %v2399_v34 = vadd.f32 %v4438_v40, %v2353_v12 }
 0x909   : > { %2472 = vmax.xlane.f32.xlu1 %v4454_v57  ;;  %v4481_v17 = vmax.f32 %v2431_v16, %v2447_v20  ;;  %v2434_v35 = vadd.f32 %v3151_v28, %v2401_v27  ;;  %v2403_v49 = vadd.f32 %v4438_v40, %v2373_v5 }
 0x90a   : > { %v2449_v24 = vmul.f32 0.2, %v2433_v33 }
 0x90b   : > { %v2450_v38 = vmul.f32 0.2, %v2434_v35 }
 0x90c   : > { %v4486_v26 = vmax.f32 %v2433_v33, %v2449_v24 }
 0x90d   : > { %v4489_v41 = vmax.f32 %v2434_v35, %v2450_v38 }
 0x910   : > { %2480 = vmax.xlane.f32.xlu2 %v4463_v3  ;;  %2478 = vmax.xlane.f32.xlu0 %v4465_v19 }
 0x918   : > { %2484 = vmax.xlane.f32.xlu0 %v4469_v7  ;;  %2482 = vmax.xlane.f32.xlu2 %v4471_v8 }
 0x922   : > { %2367 = vperm.xlu1 %3260, %v2270_v29   ;;  %v3149_v29 = vld [vmem:[%s3743_s1 + $0x140] sm:$0xff] }
 0x923   : > { %v2432_v36 = vadd.f32 %v3149_v29, %v2399_v34 }
 0x925   : > { %v2448_v15 = vmul.f32 0.2, %v2432_v36 }
 0x927   : > { %v4492_v42 = vmax.f32 %v2432_v36, %v2448_v15 }
 0x92c   : > { %2382 = vperm.xlu0 %3259, %v2279_v9  }
 0x930   : > { %2377 = vperm.xlu2 %3261, %v2276_v62  }
 0x94c   : > { %2486 = vmax.xlane.f32.xlu1 %v4481_v17 }
 0x954   : > { %2490 = vmax.xlane.f32.xlu1 %v4486_v26 }
 0x956   : > { %2492 = vmax.xlane.f32.xlu0 %v4489_v41 }
 0x959   : > { %2488 = vmax.xlane.f32.xlu2 %v4492_v42 }
 0x96d   : > { %2387 = vperm.xlu1 %3260, %v2282_v43  }
 0x97b   : > { %v2477_v23 = vpop.xlane.xlu2 %2476  ;;  %v2475_v45 = vpop.xlane.xlu0 %2474 }
 0x97c   : > { %v2473_v44 = vpop.xlane.xlu1 %2472  ;;  %v2505_v46 = vsub.f32 %v4452_v59, %v2475_v45  ;;  %v2506_v61 = vsub.f32 %v4450_v31, %v2477_v23 }
 0x97d   : > { %v2504_v14 = vsub.f32 %v4454_v57, %v2473_v44  ;;  %v2436_v57 = vadd.f32 %v3153_v50, %v2403_v49 }
 0x97e   : > { %v2522_v32 = vmul.f32 1.442695, %v2505_v46  ;;  %v2524_v51 = vmul.f32 1.442695, %v2506_v61 }
 0x97f   : > { %v2520_v37 = vmul.f32 1.442695, %v2504_v14  ;;  %v2452_v60 = vmul.f32 0.2, %v2436_v57 }
 0x981   : > { %3397 = vpow2.f32 %v2520_v37  ;;  %v4509_v1 = vmax.f32 %v2436_v57, %v2452_v60 }
 0x982   : > { %3399 = vpow2.f32 %v2522_v32 }
 0x983   : > { %v2481_v47 = vpop.xlane.xlu2 %2480  ;;  %v2479_v55 = vpop.xlane.xlu0 %2478  ;;  %3401 = vpow2.f32 %v2524_v51 }
 0x984   : > { %v2507_v59 = vsub.f32 %v4465_v19, %v2479_v55  ;;  %v2508_v19 = vsub.f32 %v4463_v3, %v2481_v47  ;;  %v3156_v47 = vld [vmem:[%s3743_s1 + $0x178] sm:$0xff]  ;;  %s2788_s1 = sshll.u32 %s523_s29, 4  ;;  %s2789_s1 = int_to_ptr.vmem [resolvable:$true] %s2788_s1 }
 0x986   : > { %v2526_v0 = vmul.f32 1.442695, %v2507_v59  ;;  %v2528_v10 = vmul.f32 1.442695, %v2508_v19 }
 0x987   : > { %v4497_v48 = vpop.eup %3397 }
 0x988   : > { %2616 = vmatmul.f32.vlgmr.msrb.gmra.mxu1 %v4497_v48  ;;  %v4503_v52 = vpop.eup %3399  ;;  %3403 = vpow2.f32 %v2526_v0 }
 0x989   : > { %v4511_v56 = vpop.eup %3401  ;;  %3405 = vpow2.f32 %v2528_v10 }
 0x98b   : > { %v2483_v30 = vpop.xlane.xlu2 %2482  ;;  %v2485_v4 = vpop.xlane.xlu0 %2484 }
 0x98c   : > { %v2509_v3 = vsub.f32 %v4471_v8, %v2483_v30  ;;  %v2510_v28 = vsub.f32 %v4469_v7, %v2485_v4 }
 0x98e   : > { %v4521_v12 = vpop.eup %3403  ;;  %v2530_v22 = vmul.f32 1.442695, %v2509_v3  ;;  %v2532_v34 = vmul.f32 1.442695, %v2510_v28 }
 0x98f   : > { %v3406_v25 = vpop.eup %3405 }
 0x990   : > { %2619 = vmatmul.f32.gmra.mxu1 %v4503_v52  ;;  %3407 = vpow2.f32 %v2530_v22 }
 0x991   : > { %3409 = vpow2.f32 %v2532_v34 }
 0x993   : > { %v2378_v31 = vpop.permute.xlu2 %2377 }
 0x994   : > { %v2368_v63 = vpop.permute.xlu1 %2367  ;;  %v2404_v6 = vadd.f32 %v4438_v40, %v2378_v31 }
 0x995   : > { %v2402_v2 = vadd.f32 %v4438_v40, %v2368_v63 }
 0x996   : > { %v2437_v62 = vadd.f32 %v3154_v54, %v2404_v6  ;;  %v4534_v35 = vpop.eup %3407 }
 0x997   : > { %v2435_v39 = vadd.f32 %v3152_v53, %v2402_v2  ;;  %2496 = vmax.xlane.f32.xlu1 %v4509_v1  ;;  %v4537_v8 = vpop.eup %3409 }
 0x998   : > { %2622 = vmatmul.f32.gmra.mxu1 %v4511_v56  ;;  %v2453_v16 = vmul.f32 0.2, %v2437_v62 }
 0x999   : > { %v2451_v58 = vmul.f32 0.2, %v2435_v39 }
 0x99a   : > { %v4527_v21 = vmax.f32 %v2437_v62, %v2453_v16 }
 0x99b   : > { %v4518_v9 = vmax.f32 %v2435_v39, %v2451_v58 }
 0x99d   : > { %2494 = vmax.xlane.f32.xlu2 %v4518_v9 }
 0x99e   : > { %v2383_v11 = vpop.permute.xlu0 %2382 }
 0x99f   : > { %v2405_v13 = vadd.f32 %v4438_v40, %v2383_v11 }
 0x9a0   : > { %2625 = vmatmul.f32.gmra.mxu1 %v4521_v12 }
 0x9a1   : > { %v2438_v20 = vadd.f32 %v3155_v18, %v2405_v13  ;;  %v4577_v18 = vld [vmem:[%s4739_s8 + $0x2] ss:$0 sm:$0xff] }
 0x9a3   : > { %v2454_v27 = vmul.f32 0.2, %v2438_v20 }
 0x9a5   : > { %2498 = vmax.xlane.f32.xlu2 %v4527_v21  ;;  %v4531_v33 = vmax.f32 %v2438_v20, %v2454_v27 }
 0x9a8   : > { %2628 = vmatmul.f32.gmra.mxu1 %v3406_v25 }
 0x9ad   : > { %2500 = vmax.xlane.f32.xlu2 %v4531_v33 }
 0x9b0   : > { %2631 = vmatmul.f32.gmra.mxu1 %v4534_v35 }
 0x9b8   : > { %2634 = vmatmul.f32.gmra.mxu1 %v4537_v8 }
 0x9bf   : > { %v2487_v29 = vpop.xlane.xlu1 %2486 }
 0x9c0   : > { %v2511_v24 = vsub.f32 %v4481_v17, %v2487_v29 }
 0x9c2   : > { %v2534_v36 = vmul.f32 1.442695, %v2511_v24 }
 0x9c4   : > { %3411 = vpow2.f32 %v2534_v36 }
 0x9c7   : > { %v2491_v44 = vpop.xlane.xlu1 %2490 }
 0x9c8   : > { %v2513_v45 = vsub.f32 %v4486_v26, %v2491_v44 }
 0x9c9   : > { %v2493_v7 = vpop.xlane.xlu0 %2492 }
 0x9ca   : > { %v3412_v38 = vpop.eup %3411  ;;  %v2514_v15 = vsub.f32 %v4489_v41, %v2493_v7  ;;  %v2538_v17 = vmul.f32 1.442695, %v2513_v45 }
 0x9cb   : > { %2637 = vmatmul.f32.gmra.mxu1 %v3412_v38 }
 0x9cc   : > { %v2540_v43 = vmul.f32 1.442695, %v2514_v15  ;;  %v2489_v5 = vpop.xlane.xlu2 %2488 }
 0x9cd   : > { %v2512_v23 = vsub.f32 %v4492_v42, %v2489_v5 }
 0x9ce   : > { %3413 = vpow2.f32 %v2540_v43 }
 0x9cf   : > { %v2536_v14 = vmul.f32 1.442695, %v2512_v23 }
 0x9d1   : > { %3415 = vpow2.f32 %v2536_v14 }
 0x9d2   : > { %3417 = vpow2.f32 %v2538_v17 }
 0x9d4   : > { %v3414_v37 = vpop.eup %3413 }
 0x9d5   : > { %2572 = vadd.xlane.f32.xlu1 %v3414_v37 }
 0x9d7   : > { %v4544_v46 = vpop.eup %3415 }
 0x9d8   : > { %2640 = vmatmul.f32.gmra.mxu1 %v4544_v46  ;;  %v3418_v41 = vpop.eup %3417 }
 0x9dd   : > { %2566 = vadd.xlane.f32.xlu1 %v3412_v38 }
 0x9df   : > { %v2388_v32 = vpop.permute.xlu1 %2387 }
 0x9e0   : > { %v2406_v42 = vadd.f32 %v4438_v40, %v2388_v32  ;;  %2643 = vmatmul.f32.gmra.mxu1 %v3418_v41 }
 0x9e2   : > { %v2439_v61 = vadd.f32 %v3156_v47, %v2406_v42 }
 0x9e4   : > { %v2455_v49 = vmul.f32 0.2, %v2439_v61 }
 0x9e5   : > { %2560 = vadd.xlane.f32.xlu1 %v3406_v25 }
 0x9e6   : > { %v2471_v26 = vmax.f32 %v2439_v61, %v2455_v49 }
 0x9e8   : > { %2502 = vmax.xlane.f32.xlu2 %v2471_v26  ;;  %2646 = vmatmul.f32.gmra.mxu1 %v3414_v37 }
 0x9ed   : > { %2554 = vadd.xlane.f32.xlu1 %v4503_v52 }
 0xa05   : > { %v4550_v50 = vpop.f32.mrf.mxu1 }
 0xa0a   : > { %v2497_v30 = vpop.xlane.xlu1 %2496 }
 0xa0b   : > { %v2516_v55 = vsub.f32 %v4509_v1, %v2497_v30 }
 0xa0d   : > { %v2544_v51 = vmul.f32 1.442695, %v2516_v55  ;;  %v4554_v40 = vpop.f32.mrf.mxu1 }
 0xa0f   : > { %3419 = vpow2.f32 %v2544_v51 }
 0xa10   : > { %v2495_v57 = vpop.xlane.xlu2 %2494 }
 0xa11   : > { %v2515_v59 = vsub.f32 %v4518_v9, %v2495_v57 }
 0xa13   : > { %v2542_v60 = vmul.f32 1.442695, %v2515_v59 }
 0xa15   : > { %v3420_v53 = vpop.eup %3419  ;;  %3421 = vpow2.f32 %v2542_v60  ;;  %v4560_v2 = vpop.f32.mrf.mxu1 }
 0xa16   : > { %2576 = vadd.xlane.f32.xlu2 %v3420_v53 }
 0xa18   : > { %v2499_v63 = vpop.xlane.xlu2 %2498 }
 0xa19   : > { %v2517_v31 = vsub.f32 %v4527_v21, %v2499_v63 }
 0xa1b   : > { %v4557_v52 = vpop.eup %3421  ;;  %v2546_v0 = vmul.f32 1.442695, %v2517_v31 }
 0xa1c   : > { %2649 = vmatmul.f32.gmra.mxu1 %v4557_v52 }
 0xa1d   : > { %3423 = vpow2.f32 %v2546_v0  ;;  %v4563_v54 = vpop.f32.mrf.mxu1 }
 0xa20   : > { %v2501_v1 = vpop.xlane.xlu2 %2500 }
 0xa21   : > { %v2518_v4 = vsub.f32 %v4531_v33, %v2501_v1 }
 0xa23   : > { %v3424_v39 = vpop.eup %3423  ;;  %v2548_v6 = vmul.f32 1.442695, %v2518_v4 }
 0xa24   : > { %2578 = vadd.xlane.f32.xlu0 %v3424_v39  ;;  %2652 = vmatmul.f32.gmra.mxu1 %v3420_v53 }
 0xa25   : > { %3425 = vpow2.f32 %v2548_v6  ;;  %v2629_v58 = vpop.f32.mrf.mxu1 }
 0xa2b   : > { %v3426_v19 = vpop.eup %3425 }
 0xa2c   : > { %2580 = vadd.xlane.f32.xlu2 %v3426_v19  ;;  %2655 = vmatmul.f32.gmra.mxu1 %v3424_v39 }
 0xa2d   : > { %v4565_v62 = vpop.f32.mrf.mxu1 }
 0xa34   : > { %2570 = vadd.xlane.f32.xlu2 %v3418_v41  ;;  %2658 = vmatmul.f32.gmra.mxu1 %v3426_v19 }
 0xa35   : > { %v4569_v9 = vpop.f32.mrf.mxu1 }
 0xa3c   : > { %2564 = vadd.xlane.f32.xlu2 %v4537_v8 }
 0xa44   : > { %2558 = vadd.xlane.f32.xlu2 %v4521_v12  ;;  %v4582_v12 = vld [vmem:[%s4740_s9 + $0x2] ss:$0 sm:$0xff] }
 0xa48   : > { %v2573_v10 = vpop.xlane.xlu1 %2572  ;;  %v2638_v11 = vpop.f32.mrf.mxu1 }
 0xa4c   : > { %2552 = vadd.xlane.f32.xlu2 %v4497_v48 }
 0xa50   : > { %v2567_v13 = vpop.xlane.xlu1 %2566 }
 0xa51   : > { %3427 = vrcp.f32 %v2567_v13 }
 0xa55   : > { %v4572_v16 = vpop.f32.mrf.mxu1 }
 0xa57   : > { %v3428_v3 = vpop.eup %3427 }
 0xa58   : > { %v2672_v20 = vmul.f32 %v3428_v3, %v2638_v11  ;;  %v2561_v21 = vpop.xlane.xlu1 %2560 }
 0xa59   : > { %3429 = vrcp.f32 %v2561_v21 }
 0xa5a   : > { %v2693_v48 = vmul.f32 %v4577_v18, %v2672_v20  ;;  %3431 = vrcp.f32 %v2573_v10 }
 0xa5b   : > { %v2503_v22 = vpop.xlane.xlu2 %2502 }
 0xa5c   : > { %v2519_v25 = vsub.f32 %v2471_v26, %v2503_v22  ;;  %v4593_v27 = vadd.f32 %v4582_v12, %v2693_v48 }
 0xa5d   : > { %v2644_v28 = vpop.f32.mrf.mxu1 }
 0xa5e   : > { %v2550_v33 = vmul.f32 1.442695, %v2519_v25  ;;  %2730 = vst.msk [vmem:[%s4590_s22 + $0x38] sm:$0xff] %vm678_vm1, %v4593_v27 }
 0xa5f   : > { %v3430_v34 = vpop.eup %3429 }
 0xa60   : > { %v2669_v8 = vmul.f32 %v3430_v34, %v2629_v58  ;;  %3433 = vpow2.f32 %v2550_v33  ;;  %v2555_v29 = vpop.xlane.xlu1 %2554  ;;  %v3432_v7 = vpop.eup %3431 }
 0xa61   : > { %3435 = vrcp.f32 %v2555_v29 }
 0xa62   : > { %v2690_v24 = vmul.f32 %v4577_v18, %v2669_v8 }
 0xa64   : > { %v4600_v36 = vadd.f32 %v4582_v12, %v2690_v24 }
 0xa65   : > { %v2647_v38 = vpop.f32.mrf.mxu1 }
 0xa66   : > { %v3434_v15 = vpop.eup %3433  ;;  %v2675_v43 = vmul.f32 %v3432_v7, %v2647_v38  ;;  %2727 = vst.msk [vmem:[%s4590_s22 + $0x20] sm:$0xff] %vm678_vm1, %v4600_v36 }
 0xa67   : > { %v3436_v5 = vpop.eup %3435  ;;  %2582 = vadd.xlane.f32.xlu0 %v3434_v15  ;;  %2661 = vmatmul.f32.gmra.mxu1 %v3434_v15 }
 0xa68   : > { %v2666_v23 = vmul.f32 %v3436_v5, %v4554_v40  ;;  %v2696_v44 = vmul.f32 %v4577_v18, %v2675_v43 }
 0xa6a   : > { %v4608_v14 = vadd.f32 %v4582_v12, %v2696_v44  ;;  %v2687_v45 = vmul.f32 %v4577_v18, %v2666_v23 }
 0xa6c   : > { %2733 = vst.msk [vmem:[%s4590_s22 + $0x50] sm:$0xff] %vm678_vm1, %v4608_v14  ;;  %v4615_v37 = vadd.f32 %v4582_v12, %v2687_v45 }
 0xa6e   : > { %2724 = vst.msk [vmem:[%s4590_s22 + $0x8] sm:$0xff] %vm678_vm1, %v4615_v37 }
 0xa6f   : > { %2574 = vadd.xlane.f32.xlu0 %v4557_v52 }
 0xa77   : > { %2568 = vadd.xlane.f32.xlu0 %v4544_v46 }
 0xa7f   : > { %2562 = vadd.xlane.f32.xlu0 %v4534_v35 }
 0xa87   : > { %2556 = vadd.xlane.f32.xlu0 %v4511_v56 }
 0xa89   : > { %v2577_v17 = vpop.xlane.xlu2 %2576 }
 0xa8a   : > { %3437 = vrcp.f32 %v2577_v17 }
 0xa90   : > { %v3438_v42 = vpop.eup %3437 }
 0xa97   : > { %v2579_v32 = vpop.xlane.xlu0 %2578 }
 0xa98   : > { %3439 = vrcp.f32 %v2579_v32 }
 0xa99   : > { %v2650_v41 = vpop.f32.mrf.mxu1 }
 0xa9e   : > { %v3440_v56 = vpop.eup %3439 }
 0xa9f   : > { %v2581_v47 = vpop.xlane.xlu2 %2580 }
 0xaa1   : > { %v2653_v61 = vpop.f32.mrf.mxu1 }
 0xaa2   : > { %v2677_v49 = vmul.f32 %v3438_v42, %v2653_v61 }
 0xaa4   : > { %v2698_v26 = vmul.f32 %v4577_v18, %v2677_v49  ;;  %v2739_v49 = vld [vmem:[%s472_s28] sm:$0xff] }
 0xaa6   : > { %v4626_v30 = vadd.f32 %v4582_v12, %v2698_v26  ;;  %v2740_v26 = vld [vmem:[%s472_s28 + $0x8] sm:$0xff] }
 0xaa7   : > { %v2571_v46 = vpop.xlane.xlu2 %2570 }
 0xaa8   : > { %3441 = vrcp.f32 %v2571_v46  ;;  %2735 = vst.msk [vmem:[%s4590_s22 + $0x60] sm:$0xff] %vm678_vm1, %v4626_v30 }
 0xaa9   : > { %v2656_v35 = vpop.f32.mrf.mxu1  ;;  %3443 = vrcp.f32 %v2581_v47 }
 0xaaa   : > { %v2678_v55 = vmul.f32 %v3440_v56, %v2656_v35 }
 0xaac   : > { %v2699_v51 = vmul.f32 %v4577_v18, %v2678_v55 }
 0xaae   : > { %v3442_v57 = vpop.eup %3441  ;;  %v2720_v59 = vadd.f32 %v4582_v12, %v2699_v51 }
 0xaaf   : > { %v2674_v40 = vmul.f32 %v3442_v57, %v2644_v28  ;;  %v2565_v60 = vpop.xlane.xlu2 %2564  ;;  %v3444_v53 = vpop.eup %3443 }
 0xab0   : > { %3445 = vrcp.f32 %v2565_v60  ;;  %2736 = vst.msk [vmem:[%s4590_s22 + $0x68] sm:$0xff] %vm678_vm1, %v2720_v59 }
 0xab1   : > { %v2659_v63 = vpop.f32.mrf.mxu1  ;;  %v2695_v31 = vmul.f32 %v4577_v18, %v2674_v40 }
 0xab2   : > { %v2679_v52 = vmul.f32 %v3444_v53, %v2659_v63 }
 0xab3   : > { %v2716_v0 = vadd.f32 %v4582_v12, %v2695_v31 }
 0xab4   : > { %v2700_v1 = vmul.f32 %v4577_v18, %v2679_v52 }
 0xab5   : > { %2732 = vst.msk [vmem:[%s4590_s22 + $0x48] sm:$0xff] %vm678_vm1, %v2716_v0 }
 0xab6   : > { %v3446_v4 = vpop.eup %3445  ;;  %v2721_v39 = vadd.f32 %v4582_v12, %v2700_v1 }
 0xab7   : > { %v2671_v6 = vmul.f32 %v3446_v4, %v4569_v9  ;;  %v2559_v19 = vpop.xlane.xlu2 %2558 }
 0xab8   : > { %3447 = vrcp.f32 %v2559_v19  ;;  %2737 = vst.msk [vmem:[%s4590_s22 + $0x70] sm:$0xff] %vm678_vm1, %v2721_v39 }
 0xab9   : > { %v2692_v58 = vmul.f32 %v4577_v18, %v2671_v6 }
 0xabb   : > { %v2713_v10 = vadd.f32 %v4582_v12, %v2692_v58 }
 0xabd   : > { %2729 = vst.msk [vmem:[%s4590_s22 + $0x30] sm:$0xff] %vm678_vm1, %v2713_v10 }
 0xabe   : > { %v3448_v11 = vpop.eup %3447 }
 0xabf   : > { %v2668_v13 = vmul.f32 %v3448_v11, %v4563_v54  ;;  %v2553_v3 = vpop.xlane.xlu2 %2552 }
 0xac0   : > { %3449 = vrcp.f32 %v2553_v3 }
 0xac1   : > { %v2689_v20 = vmul.f32 %v4577_v18, %v2668_v13 }
 0xac3   : > { %v2710_v9 = vadd.f32 %v4582_v12, %v2689_v20 }
 0xac5   : > { %2726 = vst.msk [vmem:[%s4590_s22 + $0x18] sm:$0xff] %vm678_vm1, %v2710_v9 }
 0xac6   : > { %v3450_v21 = vpop.eup %3449 }
 0xac7   : > { %v2665_v48 = vmul.f32 %v3450_v21, %v4550_v50 }
 0xac9   : > { %v2686_v22 = vmul.f32 %v4577_v18, %v2665_v48 }
 0xacb   : > { %v2707_v25 = vadd.f32 %v4582_v12, %v2686_v22 }
 0xacd   : > { %2723 = vst.msk [vmem:[%s4590_s22] sm:$0xff] %vm678_vm1, %v2707_v25 }
 0xada   : > { %v2583_v28 = vpop.xlane.xlu0 %2582 }
 0xadb   : > { %3451 = vrcp.f32 %v2583_v28 }
 0xae1   : > { %v3452_v33 = vpop.eup %3451 }
 0xae2   : > { %v2575_v54 = vpop.xlane.xlu0 %2574 }
 0xae3   : > { %3453 = vrcp.f32 %v2575_v54 }
 0xae4   : > { %v2662_v34 = vpop.f32.mrf.mxu1 }
 0xae5   : > { %v2680_v8 = vmul.f32 %v3452_v33, %v2662_v34 }
 0xae7   : > { %v2701_v29 = vmul.f32 %v4577_v18, %v2680_v8 }
 0xae9   : > { %v3454_v24 = vpop.eup %3453  ;;  %v2722_v50 = vadd.f32 %v4582_v12, %v2701_v29 }
 0xaea   : > { %v2676_v7 = vmul.f32 %v3454_v24, %v2650_v41  ;;  %v2569_v38 = vpop.xlane.xlu0 %2568 }
 0xaeb   : > { %2738 = vst.msk [vmem:[%s4590_s22 + $0x78] sm:$0xff] %vm678_vm1, %v2722_v50  ;;  %3455 = vrcp.f32 %v2569_v38  ;;  %2741 = vmatpush.msra.mxu2 %v2722_v50 }
 0xaec   : > { %v2697_v15 = vmul.f32 %v4577_v18, %v2676_v7 }
 0xaed   : > { %2742 = vmatpush.msra.mxu2 %v2721_v39 }
 0xaee   : > { %v2718_v43 = vadd.f32 %v4582_v12, %v2697_v15 }
 0xaef   : > { %2743 = vmatpush.msra.mxu2 %v2720_v59 }
 0xaf0   : > { %2734 = vst.msk [vmem:[%s4590_s22 + $0x58] sm:$0xff] %vm678_vm1, %v2718_v43 }
 0xaf1   : > { %v3456_v5 = vpop.eup %3455  ;;  %2744 = vmatpush.msra.mxu2 %v4626_v30 }
 0xaf2   : > { %v2673_v23 = vmul.f32 %v3456_v5, %v4572_v16  ;;  %v2563_v44 = vpop.xlane.xlu0 %2562 }
 0xaf3   : > { %3457 = vrcp.f32 %v2563_v44  ;;  %2745 = vmatpush.msra.mxu2 %v2718_v43 }
 0xaf4   : > { %v2694_v45 = vmul.f32 %v4577_v18, %v2673_v23 }
 0xaf5   : > { %2746 = vmatpush.msra.mxu2 %v4608_v14 }
 0xaf6   : > { %v2715_v17 = vadd.f32 %v4582_v12, %v2694_v45 }
 0xaf7   : > { %2747 = vmatpush.msra.mxu2 %v2716_v0 }
 0xaf8   : > { %2731 = vst.msk [vmem:[%s4590_s22 + $0x40] sm:$0xff] %vm678_vm1, %v2715_v17 }
 0xaf9   : > { %v3458_v41 = vpop.eup %3457  ;;  %2748 = vmatpush.msra.mxu2 %v2715_v17 }
 0xafa   : > { %v2670_v47 = vmul.f32 %v3458_v41, %v4565_v62  ;;  %v2557_v16 = vpop.xlane.xlu0 %2556 }
 0xafb   : > { %3459 = vrcp.f32 %v2557_v16  ;;  %2749 = vmatpush.msra.mxu2 %v4593_v27 }
 0xafc   : > { %v2691_v32 = vmul.f32 %v4577_v18, %v2670_v47 }
 0xafd   : > { %2750 = vmatpush.msra.mxu2 %v2713_v10 }
 0xafe   : > { %v2712_v14 = vadd.f32 %v4582_v12, %v2691_v32 }
 0xb00   : > { %2728 = vst.msk [vmem:[%s4590_s22 + $0x28] sm:$0xff] %vm678_vm1, %v2712_v14  ;;  %2751 = vmatpush.msra.mxu2 %v2712_v14 }
 0xb01   : > { %v3460_v42 = vpop.eup %3459 }
 0xb02   : > { %v2667_v61 = vmul.f32 %v3460_v42, %v4560_v2  ;;  %2752 = vmatpush.msra.mxu2 %v4600_v36 }
 0xb04   : > { %2753 = vmatpush.msra.mxu2 %v2710_v9  ;;  %v2688_v62 = vmul.f32 %v4577_v18, %v2667_v61 }
 0xb06   : > { %v2709_v27 = vadd.f32 %v4582_v12, %v2688_v62 }
 0xb08   : > { %2725 = vst.msk [vmem:[%s4590_s22 + $0x10] sm:$0xff] %vm678_vm1, %v2709_v27  ;;  %2754 = vmatpush.msra.mxu2 %v2709_v27 }
 0xb0a   : > { %2755 = vmatpush.msra.mxu2 %v4615_v37 }
 0xb0c   : > { %2756 = vmatpush.msra.mxu2 %v2707_v25 }
 0xb0d   : > { %2757 = vmatmul.f32.vlgmr.msra.gmra.mxu2 %v2739_v49 }
 0xb15   : > { %2760 = vmatmul.f32.gmra.mxu2 %v2740_v26 }
 0xb90   : > { %v2758_v2 = vpop.f32.mrf.mxu2 }
 0xb91   : > { %2764 = vst.msk [vmem:[%s523_s29] sm:$0xff] %vm678_vm1, %v2758_v2 }
 0xb98   : > { %v2761_v18 = vpop.f32.mrf.mxu2 }
 0xb99   : > { %2765 = vst.msk [vmem:[%s523_s29 + $0x8] sm:$0xff] %vm678_vm1, %v2761_v18 }
 0xb9a   : > { %3488 = shalt.err (!%p3485_p11)
}
 0xb9b   : > { %s3561_s19 = smov 128   ;;  %s3562_s30 = smov 8  }
 0xb9c   : > { %3186 = dma.vmem_to_hbm [thread:$0]  (%p3691_p12), %s2789_s1, 256, %s2791_s13, %s2772_s25, %s3561_s19, %s3561_s19, %s3562_s30  }
 0xb9d PF: > { %s4769_s29 = sld [smem:[#allocation12_spill]]  ;;  %p3189_p1 = pnand %p2925_p0, %p3695_p13 }
 0xb9f   : > { %p3190_p2 = pneg %p3189_p1 }
 0xba3   : > { %s2813_s14 = sand.u32 1, %s4769_s29  }
 0xba4   : > { %s2814_s24 = scalar_lea.sflag [#allocation4], %s2813_s14 }
 0xba5   : > { %3522 = dma.done.wait (%p3190_p2), %s2814_s24, 256  }
 0xba6   : > { %3524 = vsyncadd (%p3190_p2), %s2814_s24, 4294967040  ;;  %s4771_s23 = sld [smem:[#allocation15_spill]]  ;;  %s4776_s17 = smov %s3531_s18 }
 0xba7   : > { %s4772_s12 = sld [smem:[#allocation13_spill]]  ;;  %s4778_s20 = smov %s3543_s21 }
 0xba8   : > { %s4773_s19 = sld [smem:[#allocation17_spill]] }
 0xba9   : > { %s4774_s15 = sld [smem:[#allocation14_spill]] }
 0xbaa   : > { %s4775_s22 = sld [smem:[#allocation16_spill]] }
 0xbac   : > { %p25_p12 = scmp.ge.s32.totalorder %s4771_s23, 4  }
 0xbad   : > { %s4777_s18 = smov %s4772_s12 }
 0xbae   :  { %27 = sbr.rel (!%p25_p12) target bundleno = 10 (0xa), region = 183 }
 0xbaf   : > { %s4779_s21 = smov %s4774_s15 }
 0xbb3   :  { %2820 = vsyncpa [#allocation3], 1 }
 0xbb4   :  { %2822 = vsyncpa [#allocation3 + $0x1], 1 }
 0xbb5   :  { %2823 = vsyncpa [#allocation4], 1 }
 0xbb6   :  { %2825 = vsyncpa [#allocation4 + $0x1], 1 }

</bundles_post_ra>
